<compile_context>
chip_gen: v5e
topology: v5e:2x2
jax: 0.10.0
libtpu: 0.0.40
codegen_flags: <defaults>
</compile_context>

<pallas_src>
import functools

import jax
import jax.numpy as jnp
from jax.experimental import pallas as pl
from jax.experimental.pallas import tpu as pltpu

# ---- model constants (from the PyTorch spec) -----------------------------------------------
N_EMBD = 126
N_HEAD = 6
HEAD_SIZE = N_EMBD // N_HEAD          # 21
N_LAYER = 5
BLOCK_SIZE = 64
DROPOUT_P = 0.2                        # eval-mode identity in these kernels
LN_EPS = 1e-5

# ---- TPU layout constants -------------------------------------------------------------------
LANE = 128
SUBLANE = 8
VMEM_LIMIT_BYTES = 48 * 1024 * 1024    # explicit scoped-VMEM budget (safe on v5e/v6e/v7x)


def _round_up(x, m):
    return ((x + m - 1) // m) * m


def _pad2(a, rows, cols):
    r, c = a.shape
    return jnp.pad(a, ((0, rows - r), (0, cols - c)))


def _pad_cols(a, cols):
    return jnp.pad(a, ((0, 0), (0, cols - a.shape[1])))


# =============================== Pallas kernels ==============================================


def _layernorm_kernel(x_ref, g_ref, b_ref, o_ref, *, true_c, eps):
    x = x_ref[...].astype(jnp.float32)
    s1 = jnp.sum(x, axis=-1, keepdims=True)
    s2 = jnp.sum(x * x, axis=-1, keepdims=True)
    mean = s1 * (1.0 / true_c)
    var = s2 * (1.0 / true_c) - mean * mean        # zero-padded lanes contribute 0 to s1/s2
    inv = jax.lax.rsqrt(var + eps)
    o_ref[...] = ((x - mean) * inv * g_ref[...] + b_ref[...]).astype(o_ref.dtype)


def _linear_kernel(x_ref, w_ref, b_ref, o_ref, acc_ref):
    @pl.when(pl.program_id(2) == 0)
    def _():
        acc_ref[...] = jnp.zeros_like(acc_ref)

    acc_ref[...] += jnp.dot(x_ref[...], w_ref[...], preferred_element_type=jnp.float32)

    @pl.when(pl.program_id(2) == pl.num_programs(2) - 1)
    def _():
        o_ref[...] = (acc_ref[...] + b_ref[...]).astype(o_ref.dtype)


def _ffn_kernel(x_ref, w1_ref, b1_ref, w2_ref, b2_ref, o_ref, acc_ref):
    k = pl.program_id(1)

    @pl.when(k == 0)
    def _():
        acc_ref[...] = jnp.zeros_like(acc_ref)

    h = jnp.dot(x_ref[...], w1_ref[...], preferred_element_type=jnp.float32) + b1_ref[...]
    h = jnp.maximum(h, 0.0)
    acc_ref[...] += jnp.dot(h.astype(w2_ref.dtype), w2_ref[...],
                            preferred_element_type=jnp.float32)

    @pl.when(k == pl.num_programs(1) - 1)
    def _():
        # TODO(synk): train-mode Dropout(p=0.2) not implemented; eval-mode identity.
        o_ref[...] = (acc_ref[...] + b2_ref[...]).astype(o_ref.dtype)


def _attention_kernel(q_ref, k_ref, v_ref, o_ref, *, scale):
    q = q_ref[0].astype(jnp.float32)               # (T, HS)
    k = k_ref[0].astype(jnp.float32)               # (T, HS)
    v = v_ref[0].astype(jnp.float32)               # (T, HS)
    wei = jax.lax.dot_general(q, k, (((1,), (1,)), ((), ())),
                              preferred_element_type=jnp.float32) * scale    # (T, T)
    t = wei.shape[0]
    row = jax.lax.broadcasted_iota(jnp.int32, (t, t), 0)
    col = jax.lax.broadcasted_iota(jnp.int32, (t, t), 1)
    wei = jnp.where(col <= row, wei, jnp.float32(-1e30))                      # causal mask
    wei = wei - jnp.max(wei, axis=-1, keepdims=True)
    p = jnp.exp(wei)
    p = p / jnp.sum(p, axis=-1, keepdims=True)
    # TODO(synk): attention-weight dropout (p=0.2) is eval-mode identity here.
    o_ref[0] = jnp.dot(p, v, preferred_element_type=jnp.float32).astype(o_ref.dtype)


# =============================== pallas_call wrappers =========================================


def layer_norm(x2d, gamma, beta, *, true_c, tile_m=512):
    """x2d: (M, Cp) with Cp a multiple of 128; gamma/beta: (1, Cp), zero-padded."""
    M, Cp = x2d.shape
    tm = min(_round_up(M, SUBLANE), _round_up(tile_m, SUBLANE))
    kern = functools.partial(_layernorm_kernel, true_c=float(true_c), eps=LN_EPS)
    return pl.pallas_call(
        kern,
        out_shape=jax.ShapeDtypeStruct((M, Cp), x2d.dtype),
        grid_spec=pltpu.PrefetchScalarGridSpec(
            num_scalar_prefetch=0,
            grid=(pl.cdiv(M, tm),),
            in_specs=[
                pl.BlockSpec((tm, Cp), lambda i: (i, 0)),
                pl.BlockSpec((1, Cp), lambda i: (0, 0)),
                pl.BlockSpec((1, Cp), lambda i: (0, 0)),
            ],
            out_specs=pl.BlockSpec((tm, Cp), lambda i: (i, 0)),
        ),
        compiler_params=pltpu.CompilerParams(
            dimension_semantics=("parallel",),
            vmem_limit_bytes=VMEM_LIMIT_BYTES),
    )(x2d, gamma, beta)


def linear(x2d, w, b, *, tile_m=256, tile_n=512, tile_k=256, out_dtype=None):
    """y = x2d @ w + b.  x2d: (M, K); w: (K, N); b: (1, N); K, N multiples of 128."""
    M, K = x2d.shape
    Kw, N = w.shape
    assert K == Kw and K % LANE == 0 and N % LANE == 0
    out_dtype = out_dtype or x2d.dtype

    tm = min(_round_up(M, SUBLANE), _round_up(tile_m, SUBLANE))
    tn = min(N, _round_up(tile_n, LANE))
    tk = min(K, _round_up(tile_k, LANE))
    if K % tk:                   # reduction axis must cover K exactly; 128 always divides K
        tk = LANE

    grid = (pl.cdiv(M, tm), pl.cdiv(N, tn), K // tk)
    return pl.pallas_call(
        _linear_kernel,
        out_shape=jax.ShapeDtypeStruct((M, N), out_dtype),
        grid_spec=pltpu.PrefetchScalarGridSpec(
            num_scalar_prefetch=0,
            grid=grid,
            in_specs=[
                pl.BlockSpec((tm, tk), lambda i, j, k: (i, k)),
                pl.BlockSpec((tk, tn), lambda i, j, k: (k, j)),
                pl.BlockSpec((1, tn), lambda i, j, k: (0, j)),
            ],
            out_specs=pl.BlockSpec((tm, tn), lambda i, j, k: (i, j)),
            scratch_shapes=[pltpu.VMEM((tm, tn), jnp.float32)],
        ),
        compiler_params=pltpu.CompilerParams(
            dimension_semantics=("parallel", "parallel", "arbitrary"),
            vmem_limit_bytes=VMEM_LIMIT_BYTES),
    )(x2d, w, b)


def feed_forward(x2d, w1, b1, w2, b2, *, tile_m=256, tile_h=256, out_dtype=None):
    """Fused Linear(C->H) -> ReLU -> Linear(H->C) (+ eval-mode dropout = identity).

    x2d: (M, Cp); w1: (Cp, Hp); b1: (1, Hp); w2: (Hp, Cp); b2: (1, Cp).
    The hidden dim Hp is tiled as the trailing 'arbitrary' reduction axis.
    """
    M, Cp = x2d.shape
    Hp = w1.shape[1]
    assert Cp % LANE == 0 and Hp % LANE == 0
    out_dtype = out_dtype or x2d.dtype

    tm = min(_round_up(M, SUBLANE), _round_up(tile_m, SUBLANE))
    th = min(Hp, _round_up(tile_h, LANE))
    if Hp % th:
        th = LANE

    grid = (pl.cdiv(M, tm), Hp // th)
    return pl.pallas_call(
        _ffn_kernel,
        out_shape=jax.ShapeDtypeStruct((M, Cp), out_dtype),
        grid_spec=pltpu.PrefetchScalarGridSpec(
            num_scalar_prefetch=0,
            grid=grid,
            in_specs=[
                pl.BlockSpec((tm, Cp), lambda i, k: (i, 0)),
                pl.BlockSpec((Cp, th), lambda i, k: (0, k)),
                pl.BlockSpec((1, th), lambda i, k: (0, k)),
                pl.BlockSpec((th, Cp), lambda i, k: (k, 0)),
                pl.BlockSpec((1, Cp), lambda i, k: (0, 0)),
            ],
            out_specs=pl.BlockSpec((tm, Cp), lambda i, k: (i, 0)),
            scratch_shapes=[pltpu.VMEM((tm, Cp), jnp.float32)],
        ),
        compiler_params=pltpu.CompilerParams(
            dimension_semantics=("parallel", "arbitrary"),
            vmem_limit_bytes=VMEM_LIMIT_BYTES),
    )(x2d, w1, b1, w2, b2)


def causal_attention(q, k, v, *, scale):
    """q, k, v: (B*NH, T, HS) -> (B*NH, T, HS); one (batch, head) slice per grid step."""
    BH, T, HS = q.shape
    kern = functools.partial(_attention_kernel, scale=float(scale))

    def spec():
        return pl.BlockSpec((1, T, HS), lambda i: (i, 0, 0))

    return pl.pallas_call(
        kern,
        out_shape=jax.ShapeDtypeStruct((BH, T, HS), q.dtype),
        grid_spec=pltpu.PrefetchScalarGridSpec(
            num_scalar_prefetch=0,
            grid=(BH,),
            in_specs=[spec(), spec(), spec()],
            out_specs=spec(),
        ),
        compiler_params=pltpu.CompilerParams(
            dimension_semantics=("parallel",),
            vmem_limit_bytes=VMEM_LIMIT_BYTES),
    )(q, k, v)


# =============================== model assembly ==============================================


def _block_forward(x2d, p, B, T, compute_dtype):
    M, Cp = x2d.shape
    C = N_EMBD
    QKV = 3 * C
    QKVp = _round_up(QKV, LANE)
    Hp = _round_up(4 * C, LANE)

    # --- multi-head causal self-attention (pre-LN, residual) ---
    h = layer_norm(x2d, _pad_cols(p["ln1_g"], Cp), _pad_cols(p["ln1_b"], Cp), true_c=C)
    qkv = linear(h, _pad2(p["w_qkv"], Cp, QKVp).astype(compute_dtype),
                 jnp.zeros((1, QKVp), jnp.float32))           # q/k/v Linears have no bias
    qkv = qkv[:, :QKV].reshape(B, T, QKV)
    q, k, v = jnp.split(qkv, 3, axis=-1)

    def heads(t):  # (B, T, C) -> (B*NH, T, HS)
        return t.reshape(B, T, N_HEAD, HEAD_SIZE).transpose(0, 2, 1, 3).reshape(
            B * N_HEAD, T, HEAD_SIZE)

    att = causal_attention(heads(q), heads(k), heads(v), scale=C ** -0.5)
    att = att.reshape(B, N_HEAD, T, HEAD_SIZE).transpose(0, 2, 1, 3).reshape(M, C)
    att = _pad_cols(att, Cp)
    # projection + residual (post-projection dropout is eval-mode identity)
    x2d = x2d + linear(att, _pad2(p["w_proj"], Cp, Cp).astype(compute_dtype),
                       _pad_cols(p["b_proj"], Cp))

    # --- feed-forward (pre-LN, residual) ---
    h2 = layer_norm(x2d, _pad_cols(p["ln2_g"], Cp), _pad_cols(p["ln2_b"], Cp), true_c=C)
    ff = feed_forward(h2,
                      _pad2(p["w1"], Cp, Hp).astype(compute_dtype), _pad_cols(p["b1"], Hp),
                      _pad2(p["w2"], Hp, Cp).astype(compute_dtype), _pad_cols(p["b2"], Cp))
    return x2d + ff


@functools.partial(jax.jit, static_argnames=("compute_dtype",))
def transformer_lm(params, idx, *, compute_dtype=jnp.float32):
    """idx: (B, T) int32 token ids -> logits (B, T, vocab).  Eval mode (dropout = identity)."""
    B, T = idx.shape
    C = N_EMBD
    Cp = _round_up(C, LANE)

    # TODO(synk): embedding gathers are plain JAX (no Pallas gather kernel here).
    x = jnp.take(params["tok_embd"], idx, axis=0) + params["pos_embd"][:T][None, :, :]
    x2d = _pad_cols(x.reshape(B * T, C), Cp).astype(compute_dtype)

    for p in params["blocks"]:
        x2d = _block_forward(x2d, p, B, T, compute_dtype)

    x2d = layer_norm(x2d, _pad_cols(params["ln_f_g"], Cp),
                     _pad_cols(params["ln_f_b"], Cp), true_c=C)

    V = params["lm_b"].shape[1]
    Vp = _round_up(V, LANE)
    logits = linear(x2d, _pad2(params["lm_w"], Cp, Vp).astype(compute_dtype),
                    _pad_cols(params["lm_b"], Vp), out_dtype=jnp.float32)
    return logits[:, :V].reshape(B, T, V)


def init_params(key, vocab_size, n_layer=N_LAYER):
    """Matches PyTorch defaults: Embedding ~ N(0,1); Linear ~ U(+-1/sqrt(fan_in)); LN = (1,0)."""
    keys = iter(jax.random.split(key, 4 + 7 * n_layer))

    def uniform(shape, fan_in):
        bound = 1.0 / (fan_in ** 0.5)
        return jax.random.uniform(next(keys), shape, jnp.float32, -bound, bound)

    C, H = N_EMBD, 4 * N_EMBD
    params = {
        "tok_embd": jax.random.normal(next(keys), (vocab_size, C), jnp.float32),
        "pos_embd": jax.random.normal(next(keys), (BLOCK_SIZE, C), jnp.float32),
        "blocks": [],
        "ln_f_g": jnp.ones((1, C), jnp.float32),
        "ln_f_b": jnp.zeros((1, C), jnp.float32),
        "lm_w": uniform((C, vocab_size), C),
        "lm_b": uniform((1, vocab_size), C),
    }
    for _ in range(n_layer):
        params["blocks"].append({
            "ln1_g": jnp.ones((1, C), jnp.float32),
            "ln1_b": jnp.zeros((1, C), jnp.float32),
            "w_qkv": uniform((C, 3 * C), C),        # per-head q|k|v weights, concatenated
            "w_proj": uniform((C, C), C),
            "b_proj": uniform((1, C), C),
            "ln2_g": jnp.ones((1, C), jnp.float32),
            "ln2_b": jnp.zeros((1, C), jnp.float32),
            "w1": uniform((C, H), C),
            "b1": uniform((1, H), C),
            "w2": uniform((H, C), H),
            "b2": uniform((1, C), H),
        })
    return params


def reference_forward(params, idx):
    """Pure-JAX reference of the PyTorch module in eval mode (dropout = identity)."""
    B, T = idx.shape
    C = N_EMBD

    def ln(x, g, b):
        mu = jnp.mean(x, axis=-1, keepdims=True)
        var = jnp.var(x, axis=-1, keepdims=True)
        return (x - mu) * jax.lax.rsqrt(var + LN_EPS) * g + b

    x = params["tok_embd"][idx] + params["pos_embd"][:T][None, :, :]
    mask = jnp.tril(jnp.ones((T, T), dtype=bool))
    for p in params["blocks"]:
        h = ln(x, p["ln1_g"], p["ln1_b"])
        q, k, v = jnp.split(h @ p["w_qkv"], 3, axis=-1)

        def heads(t):
            return t.reshape(B, T, N_HEAD, HEAD_SIZE).transpose(0, 2, 1, 3)

        wei = jnp.einsum("bhqd,bhkd->bhqk", heads(q), heads(k)) * (C ** -0.5)
        wei = jnp.where(mask, wei, -jnp.inf)
        wei = jax.nn.softmax(wei, axis=-1)
        att = jnp.einsum("bhqk,bhkd->bhqd", wei, heads(v))
        att = att.transpose(0, 2, 1, 3).reshape(B, T, C)
        x = x + att @ p["w_proj"] + p["b_proj"]

        h2 = ln(x, p["ln2_g"], p["ln2_b"])
        x = x + jnp.maximum(h2 @ p["w1"] + p["b1"], 0.0) @ p["w2"] + p["b2"]

    x = ln(x, params["ln_f_g"], params["ln_f_b"])
    return x @ params["lm_w"] + params["lm_b"]


if __name__ == "__main__":
    key = jax.random.PRNGKey(0)
    k_param, k_idx, k_x = jax.random.split(key, 3)

    vocab_size = 65              # stand-in for len(sorted(set(text)))
    B, T = 2, 8                  # small demo: batch=2, seq=8 (<= block_size=64)

    params = init_params(k_param, vocab_size)
    idx = jax.random.randint(k_idx, (B, T), 0, vocab_size, dtype=jnp.int32)

    # 1) Full forward through the Pallas kernels (f32 operands, f32 accumulation).
    logits = transformer_lm(params, idx, compute_dtype=jnp.float32)
    logits = jax.block_until_ready(logits)
    assert logits.shape == (B, T, vocab_size)

    with jax.default_matmul_precision("highest"):
        ref = reference_forward(params, idx)
    err = float(jnp.max(jnp.abs(logits - ref)))
    assert err < 3e-3, f"max |kernel - reference| = {err}"

    # 2) Fused FFN kernel with bf16 MXU operands + f32 accumulation (v6e/v7x-friendly path).
    C, H = N_EMBD, 4 * N_EMBD
    Cp, Hp = _round_up(C, LANE), _round_up(H, LANE)
    p0 = params["blocks"][0]
    x_ff = jax.random.normal(k_x, (B * T, C), jnp.float32)
    y_bf16 = feed_forward(
        _pad_cols(x_ff, Cp).astype(jnp.bfloat16),
        _pad2(p0["w1"], Cp, Hp).astype(jnp.bfloat16), _pad_cols(p0["b1"], Hp),
        _pad2(p0["w2"], Hp, Cp).astype(jnp.bfloat16), _pad_cols(p0["b2"], Cp),
        out_dtype=jnp.float32)
    y_bf16 = jax.block_until_ready(y_bf16)[:, :C]
    with jax.default_matmul_precision("highest"):
        y_ref = jnp.maximum(x_ff @ p0["w1"] + p0["b1"], 0.0) @ p0["w2"] + p0["b2"]
    assert jnp.allclose(y_bf16, y_ref, atol=5e-2, rtol=5e-2), float(
        jnp.max(jnp.abs(y_bf16 - y_ref)))

    print("KERNEL_OK")
</pallas_src>

<mosaic_0001>
module attributes {stable_mosaic.version = 11 : i64} {
  func.func @_layernorm_kernel(%arg0: i32, %arg1: memref<16x128xf32, #tpu.memory_space<vmem>>, %arg2: memref<1x128xf32, #tpu.memory_space<vmem>>, %arg3: memref<1x128xf32, #tpu.memory_space<vmem>>, %arg4: memref<16x128xf32, #tpu.memory_space<vmem>>) attributes {dimension_semantics = [#tpu.dimension_semantics<parallel>], iteration_bounds = array<i64: 1>, scalar_prefetch = 0 : i64, scratch_operands = 0 : i64, tpu.core_type = #tpu.core_type<tc>, window_params = [{transform_indices = @transform_0, window_bounds = array<i64: 16, 128>}, {pipeline_mode = #tpu.pipeline_mode<synchronous>, transform_indices = @transform_1, window_bounds = array<i64: 1, 128>}, {pipeline_mode = #tpu.pipeline_mode<synchronous>, transform_indices = @transform_2, window_bounds = array<i64: 1, 128>}, {transform_indices = @transform_3, window_bounds = array<i64: 16, 128>}]} {
    %c0 = arith.constant 0 : index
    %c0_0 = arith.constant 0 : index
    %0 = vector.load %arg1[%c0, %c0_0] : memref<16x128xf32, #tpu.memory_space<vmem>>, vector<16x128xf32>
    %cst = arith.constant dense<0.000000e+00> : vector<16xf32>
    %1 = vector.multi_reduction <add>, %0, %cst [1] : vector<16x128xf32> to vector<16xf32>
    %2 = vector.shape_cast %1 : vector<16xf32> to vector<16x1xf32>
    %3 = arith.mulf %0, %0 : vector<16x128xf32>
    %cst_1 = arith.constant dense<0.000000e+00> : vector<16xf32>
    %4 = vector.multi_reduction <add>, %3, %cst_1 [1] : vector<16x128xf32> to vector<16xf32>
    %5 = vector.shape_cast %4 : vector<16xf32> to vector<16x1xf32>
    %cst_2 = arith.constant 0.00793650839 : f32
    %6 = vector.broadcast %cst_2 : f32 to vector<16x1xf32>
    %7 = arith.mulf %2, %6 : vector<16x1xf32>
    %cst_3 = arith.constant 0.00793650839 : f32
    %8 = vector.broadcast %cst_3 : f32 to vector<16x1xf32>
    %9 = arith.mulf %5, %8 : vector<16x1xf32>
    %10 = arith.mulf %7, %7 : vector<16x1xf32>
    %11 = arith.subf %9, %10 : vector<16x1xf32>
    %cst_4 = arith.constant 9.99999974E-6 : f32
    %12 = vector.broadcast %cst_4 : f32 to vector<16x1xf32>
    %13 = arith.addf %11, %12 : vector<16x1xf32>
    %14 = math.rsqrt %13 : vector<16x1xf32>
    %15 = vector.broadcast %7 : vector<16x1xf32> to vector<16x128xf32>
    %16 = arith.subf %0, %15 : vector<16x128xf32>
    %17 = vector.broadcast %14 : vector<16x1xf32> to vector<16x128xf32>
    %18 = arith.mulf %16, %17 : vector<16x128xf32>
    %c0_5 = arith.constant 0 : index
    %c0_6 = arith.constant 0 : index
    %19 = vector.load %arg2[%c0_5, %c0_6] : memref<1x128xf32, #tpu.memory_space<vmem>>, vector<1x128xf32>
    %20 = vector.broadcast %19 : vector<1x128xf32> to vector<16x128xf32>
    %21 = arith.mulf %18, %20 : vector<16x128xf32>
    %c0_7 = arith.constant 0 : index
    %c0_8 = arith.constant 0 : index
    %22 = vector.load %arg3[%c0_7, %c0_8] : memref<1x128xf32, #tpu.memory_space<vmem>>, vector<1x128xf32>
    %23 = vector.broadcast %22 : vector<1x128xf32> to vector<16x128xf32>
    %24 = arith.addf %21, %23 : vector<16x128xf32>
    %c0_9 = arith.constant 0 : index
    %c0_10 = arith.constant 0 : index
    %25 = vector.load %arg4[%c0_9, %c0_10] : memref<16x128xf32, #tpu.memory_space<vmem>>, vector<16x128xf32>
    tpu.vector_store %arg4[%c0_9, %c0_10], %24 {strides = array<i32>} : memref<16x128xf32, #tpu.memory_space<vmem>>, vector<16x128xf32>,
    return
  }
  func.func @transform_0(%arg0: i32) -> (i32, i32) {
    %c0_i32 = arith.constant 0 : i32
    %c0_i32_0 = arith.constant 0 : i32
    return %arg0, %c0_i32 : i32, i32
  }
  func.func @transform_1(%arg0: i32) -> (i32, i32) {
    %c0_i32 = arith.constant 0 : i32
    %c0_i32_0 = arith.constant 0 : i32
    %c0_i32_1 = arith.constant 0 : i32
    return %c0_i32, %c0_i32_0 : i32, i32
  }
  func.func @transform_2(%arg0: i32) -> (i32, i32) {
    %c0_i32 = arith.constant 0 : i32
    %c0_i32_0 = arith.constant 0 : i32
    %c0_i32_1 = arith.constant 0 : i32
    return %c0_i32, %c0_i32_0 : i32, i32
  }
  func.func @transform_3(%arg0: i32) -> (i32, i32) {
    %c0_i32 = arith.constant 0 : i32
    %c0_i32_0 = arith.constant 0 : i32
    return %arg0, %c0_i32 : i32, i32
  }
}

module attributes {stable_mosaic.version = 11 : i64} {
  func.func @_linear_kernel(%arg0: i32, %arg1: i32, %arg2: i32, %arg3: memref<16x128xf32, #tpu.memory_space<vmem>>, %arg4: memref<128x384xf32, #tpu.memory_space<vmem>>, %arg5: memref<1x384xf32, #tpu.memory_space<vmem>>, %arg6: memref<16x384xf32, #tpu.memory_space<vmem>>, %arg7: memref<16x384xf32, #tpu.memory_space<vmem>>) attributes {dimension_semantics = [#tpu.dimension_semantics<parallel>, #tpu.dimension_semantics<parallel>, #tpu.dimension_semantics<arbitrary>], iteration_bounds = array<i64: 1, 1, 1>, scalar_prefetch = 0 : i64, scratch_operands = 1 : i64, tpu.core_type = #tpu.core_type<tc>, window_params = [{transform_indices = @transform_0, window_bounds = array<i64: 16, 128>}, {transform_indices = @transform_1, window_bounds = array<i64: 128, 384>}, {transform_indices = @transform_2, window_bounds = array<i64: 1, 384>}, {transform_indices = @transform_3, window_bounds = array<i64: 16, 384>}]} {
    %c0_i32 = arith.constant 0 : i32
    %0 = arith.cmpi eq, %arg2, %c0_i32 : i32
    %1 = arith.extui %0 : i1 to i32
    %c0_i32_0 = arith.constant 0 : i32
    %2 = arith.cmpi ne, %1, %c0_i32_0 : i32
    scf.if %2 {
      %cst_10 = arith.constant 0.000000e+00 : f32
      %12 = vector.broadcast %cst_10 : f32 to vector<16x384xf32>
      %c0_11 = arith.constant 0 : index
      %c0_12 = arith.constant 0 : index
      %13 = vector.load %arg7[%c0_11, %c0_12] : memref<16x384xf32, #tpu.memory_space<vmem>>, vector<16x384xf32>
      tpu.vector_store %arg7[%c0_11, %c0_12], %12 {strides = array<i32>} : memref<16x384xf32, #tpu.memory_space<vmem>>, vector<16x384xf32>,
    } else {
    }
    %c0 = arith.constant 0 : index
    %c0_1 = arith.constant 0 : index
    %3 = vector.load %arg7[%c0, %c0_1] : memref<16x384xf32, #tpu.memory_space<vmem>>, vector<16x384xf32>
    %c0_2 = arith.constant 0 : index
    %c0_3 = arith.constant 0 : index
    %4 = vector.load %arg3[%c0_2, %c0_3] : memref<16x128xf32, #tpu.memory_space<vmem>>, vector<16x128xf32>
    %c0_4 = arith.constant 0 : index
    %c0_5 = arith.constant 0 : index
    %5 = vector.load %arg4[%c0_4, %c0_5] : memref<128x384xf32, #tpu.memory_space<vmem>>, vector<128x384xf32>
    %cst = arith.constant dense<0.000000e+00> : vector<16x384xf32>
    %6 = tpu.matmul %4, %5, %cst {dimension_numbers = #tpu.dot_dimension_numbers<[1], [0], [0], [1], [0, 0, 1, 1], [], []>} : vector<16x128xf32>, vector<128x384xf32>, vector<16x384xf32> -> vector<16x384xf32>
    %7 = arith.addf %3, %6 : vector<16x384xf32>
    %c0_6 = arith.constant 0 : index
    %c0_7 = arith.constant 0 : index
    %8 = vector.load %arg7[%c0_6, %c0_7] : memref<16x384xf32, #tpu.memory_space<vmem>>, vector<16x384xf32>
    tpu.vector_store %arg7[%c0_6, %c0_7], %7 {strides = array<i32>} : memref<16x384xf32, #tpu.memory_space<vmem>>, vector<16x384xf32>,
    %c0_i32_8 = arith.constant 0 : i32
    %9 = arith.cmpi eq, %arg2, %c0_i32_8 : i32
    %10 = arith.extui %9 : i1 to i32
    %c0_i32_9 = arith.constant 0 : i32
    %11 = arith.cmpi ne, %10, %c0_i32_9 : i32
    scf.if %11 {
      %c0_10 = arith.constant 0 : index
      %c0_11 = arith.constant 0 : index
      %12 = vector.load %arg7[%c0_10, %c0_11] : memref<16x384xf32, #tpu.memory_space<vmem>>, vector<16x384xf32>
      %c0_12 = arith.constant 0 : index
      %c0_13 = arith.constant 0 : index
      %13 = vector.load %arg5[%c0_12, %c0_13] : memref<1x384xf32, #tpu.memory_space<vmem>>, vector<1x384xf32>
      %14 = vector.broadcast %13 : vector<1x384xf32> to vector<16x384xf32>
      %15 = arith.addf %12, %14 : vector<16x384xf32>
      %c0_14 = arith.constant 0 : index
      %c0_15 = arith.constant 0 : index
      %16 = vector.load %arg6[%c0_14, %c0_15] : memref<16x384xf32, #tpu.memory_space<vmem>>, vector<16x384xf32>
      tpu.vector_store %arg6[%c0_14, %c0_15], %15 {strides = array<i32>} : memref<16x384xf32, #tpu.memory_space<vmem>>, vector<16x384xf32>,
    } else {
    }
    return
  }
  func.func @transform_0(%arg0: i32, %arg1: i32, %arg2: i32) -> (i32, i32) {
    %c0_i32 = arith.constant 0 : i32
    return %arg0, %arg2 : i32, i32
  }
  func.func @transform_1(%arg0: i32, %arg1: i32, %arg2: i32) -> (i32, i32) {
    %c0_i32 = arith.constant 0 : i32
    return %arg2, %arg1 : i32, i32
  }
  func.func @transform_2(%arg0: i32, %arg1: i32, %arg2: i32) -> (i32, i32) {
    %c0_i32 = arith.constant 0 : i32
    %c0_i32_0 = arith.constant 0 : i32
    return %c0_i32, %arg1 : i32, i32
  }
  func.func @transform_3(%arg0: i32, %arg1: i32, %arg2: i32) -> (i32, i32) {
    %c0_i32 = arith.constant 0 : i32
    return %arg0, %arg1 : i32, i32
  }
}

module attributes {stable_mosaic.version = 11 : i64} {
  func.func @_attention_kernel(%arg0: i32, %arg1: memref<1x8x21xf32, #tpu.memory_space<vmem>>, %arg2: memref<1x8x21xf32, #tpu.memory_space<vmem>>, %arg3: memref<1x8x21xf32, #tpu.memory_space<vmem>>, %arg4: memref<1x8x21xf32, #tpu.memory_space<vmem>>) attributes {dimension_semantics = [#tpu.dimension_semantics<parallel>], iteration_bounds = array<i64: 12>, scalar_prefetch = 0 : i64, scratch_operands = 0 : i64, tpu.core_type = #tpu.core_type<tc>, window_params = [{transform_indices = @transform_0, window_bounds = array<i64: 1, 8, 21>}, {transform_indices = @transform_1, window_bounds = array<i64: 1, 8, 21>}, {transform_indices = @transform_2, window_bounds = array<i64: 1, 8, 21>}, {transform_indices = @transform_3, window_bounds = array<i64: 1, 8, 21>}]} {
    %c0 = arith.constant 0 : index
    %c0_0 = arith.constant 0 : index
    %c0_1 = arith.constant 0 : index
    %0 = vector.load %arg1[%c0, %c0_0, %c0_1] : memref<1x8x21xf32, #tpu.memory_space<vmem>>, vector<1x8x21xf32>
    %1 = vector.shape_cast %0 : vector<1x8x21xf32> to vector<8x21xf32>
    %c0_2 = arith.constant 0 : index
    %c0_3 = arith.constant 0 : index
    %c0_4 = arith.constant 0 : index
    %2 = vector.load %arg2[%c0_2, %c0_3, %c0_4] : memref<1x8x21xf32, #tpu.memory_space<vmem>>, vector<1x8x21xf32>
    %3 = vector.shape_cast %2 : vector<1x8x21xf32> to vector<8x21xf32>
    %c0_5 = arith.constant 0 : index
    %c0_6 = arith.constant 0 : index
    %c0_7 = arith.constant 0 : index
    %4 = vector.load %arg3[%c0_5, %c0_6, %c0_7] : memref<1x8x21xf32, #tpu.memory_space<vmem>>, vector<1x8x21xf32>
    %5 = vector.shape_cast %4 : vector<1x8x21xf32> to vector<8x21xf32>
    %cst = arith.constant dense<0.000000e+00> : vector<8x8xf32>
    %6 = tpu.matmul %1, %3, %cst {dimension_numbers = #tpu.dot_dimension_numbers<[1], [1], [0], [0], [0, 0, 1, 0], [], []>} : vector<8x21xf32>, vector<8x21xf32>, vector<8x8xf32> -> vector<8x8xf32>
    %cst_8 = arith.constant 0.0890870839 : f32
    %7 = vector.broadcast %cst_8 : f32 to vector<8x8xf32>
    %8 = arith.mulf %6, %7 : vector<8x8xf32>
    %9 = tpu.iota {dimensions = array<i32: 0>} : vector<8x8xi32>
    %10 = tpu.iota {dimensions = array<i32: 1>} : vector<8x8xi32>
    %11 = arith.cmpi sle, %10, %9 : vector<8x8xi32>
    %cst_9 = arith.constant -1.000000e+30 : f32
    %12 = vector.broadcast %cst_9 : f32 to vector<8x8xf32>
    %13 = arith.select %11, %8, %12 : vector<8x8xi1>, vector<8x8xf32>
    %cst_10 = arith.constant dense<0xFF800000> : vector<8xf32>
    %14 = vector.multi_reduction <maximumf>, %13, %cst_10 [1] : vector<8x8xf32> to vector<8xf32>
    %15 = vector.shape_cast %14 : vector<8xf32> to vector<8x1xf32>
    %16 = vector.broadcast %15 : vector<8x1xf32> to vector<8x8xf32>
    %17 = arith.subf %13, %16 : vector<8x8xf32>
    %18 = math.exp %17 : vector<8x8xf32>
    %cst_11 = arith.constant dense<0.000000e+00> : vector<8xf32>
    %19 = vector.multi_reduction <add>, %18, %cst_11 [1] : vector<8x8xf32> to vector<8xf32>
    %20 = vector.shape_cast %19 : vector<8xf32> to vector<8x1xf32>
    %21 = vector.broadcast %20 : vector<8x1xf32> to vector<8x8xf32>
    %22 = arith.divf %18, %21 : vector<8x8xf32>
    %cst_12 = arith.constant dense<0.000000e+00> : vector<8x21xf32>
    %23 = tpu.matmul %22, %5, %cst_12 {dimension_numbers = #tpu.dot_dimension_numbers<[1], [0], [0], [1], [0, 0, 1, 1], [], []>} : vector<8x8xf32>, vector<8x21xf32>, vector<8x21xf32> -> vector<8x21xf32>
    %c0_13 = arith.constant 0 : index
    %c0_14 = arith.constant 0 : index
    %c0_15 = arith.constant 0 : index
    %24 = vector.load %arg4[%c0_13, %c0_14, %c0_15] : memref<1x8x21xf32, #tpu.memory_space<vmem>>, vector<1x8x21xf32>
    %25 = vector.shape_cast %24 : vector<1x8x21xf32> to vector<8x21xf32>
    %26 = vector.shape_cast %23 : vector<8x21xf32> to vector<1x8x21xf32>
    tpu.vector_store %arg4[%c0_13, %c0_14, %c0_15], %26 {strides = array<i32>} : memref<1x8x21xf32, #tpu.memory_space<vmem>>, vector<1x8x21xf32>,
    return
  }
  func.func @transform_0(%arg0: i32) -> (i32, i32, i32) {
    %c0_i32 = arith.constant 0 : i32
    %c0_i32_0 = arith.constant 0 : i32
    %c0_i32_1 = arith.constant 0 : i32
    return %arg0, %c0_i32, %c0_i32_0 : i32, i32, i32
  }
  func.func @transform_1(%arg0: i32) -> (i32, i32, i32) {
    %c0_i32 = arith.constant 0 : i32
    %c0_i32_0 = arith.constant 0 : i32
    %c0_i32_1 = arith.constant 0 : i32
    return %arg0, %c0_i32, %c0_i32_0 : i32, i32, i32
  }
  func.func @transform_2(%arg0: i32) -> (i32, i32, i32) {
    %c0_i32 = arith.constant 0 : i32
    %c0_i32_0 = arith.constant 0 : i32
    %c0_i32_1 = arith.constant 0 : i32
    return %arg0, %c0_i32, %c0_i32_0 : i32, i32, i32
  }
  func.func @transform_3(%arg0: i32) -> (i32, i32, i32) {
    %c0_i32 = arith.constant 0 : i32
    %c0_i32_0 = arith.constant 0 : i32
    %c0_i32_1 = arith.constant 0 : i32
    return %arg0, %c0_i32, %c0_i32_0 : i32, i32, i32
  }
}

module attributes {stable_mosaic.version = 11 : i64} {
  func.func @_linear_kernel(%arg0: i32, %arg1: i32, %arg2: i32, %arg3: memref<16x128xf32, #tpu.memory_space<vmem>>, %arg4: memref<128x128xf32, #tpu.memory_space<vmem>>, %arg5: memref<1x128xf32, #tpu.memory_space<vmem>>, %arg6: memref<16x128xf32, #tpu.memory_space<vmem>>, %arg7: memref<16x128xf32, #tpu.memory_space<vmem>>) attributes {dimension_semantics = [#tpu.dimension_semantics<parallel>, #tpu.dimension_semantics<parallel>, #tpu.dimension_semantics<arbitrary>], iteration_bounds = array<i64: 1, 1, 1>, scalar_prefetch = 0 : i64, scratch_operands = 1 : i64, tpu.core_type = #tpu.core_type<tc>, window_params = [{transform_indices = @transform_0, window_bounds = array<i64: 16, 128>}, {transform_indices = @transform_1, window_bounds = array<i64: 128, 128>}, {transform_indices = @transform_2, window_bounds = array<i64: 1, 128>}, {transform_indices = @transform_3, window_bounds = array<i64: 16, 128>}]} {
    %c0_i32 = arith.constant 0 : i32
    %0 = arith.cmpi eq, %arg2, %c0_i32 : i32
    %1 = arith.extui %0 : i1 to i32
    %c0_i32_0 = arith.constant 0 : i32
    %2 = arith.cmpi ne, %1, %c0_i32_0 : i32
    scf.if %2 {
      %cst_10 = arith.constant 0.000000e+00 : f32
      %12 = vector.broadcast %cst_10 : f32 to vector<16x128xf32>
      %c0_11 = arith.constant 0 : index
      %c0_12 = arith.constant 0 : index
      %13 = vector.load %arg7[%c0_11, %c0_12] : memref<16x128xf32, #tpu.memory_space<vmem>>, vector<16x128xf32>
      tpu.vector_store %arg7[%c0_11, %c0_12], %12 {strides = array<i32>} : memref<16x128xf32, #tpu.memory_space<vmem>>, vector<16x128xf32>,
    } else {
    }
    %c0 = arith.constant 0 : index
    %c0_1 = arith.constant 0 : index
    %3 = vector.load %arg7[%c0, %c0_1] : memref<16x128xf32, #tpu.memory_space<vmem>>, vector<16x128xf32>
    %c0_2 = arith.constant 0 : index
    %c0_3 = arith.constant 0 : index
    %4 = vector.load %arg3[%c0_2, %c0_3] : memref<16x128xf32, #tpu.memory_space<vmem>>, vector<16x128xf32>
    %c0_4 = arith.constant 0 : index
    %c0_5 = arith.constant 0 : index
    %5 = vector.load %arg4[%c0_4, %c0_5] : memref<128x128xf32, #tpu.memory_space<vmem>>, vector<128x128xf32>
    %cst = arith.constant dense<0.000000e+00> : vector<16x128xf32>
    %6 = tpu.matmul %4, %5, %cst {dimension_numbers = #tpu.dot_dimension_numbers<[1], [0], [0], [1], [0, 0, 1, 1], [], []>} : vector<16x128xf32>, vector<128x128xf32>, vector<16x128xf32> -> vector<16x128xf32>
    %7 = arith.addf %3, %6 : vector<16x128xf32>
    %c0_6 = arith.constant 0 : index
    %c0_7 = arith.constant 0 : index
    %8 = vector.load %arg7[%c0_6, %c0_7] : memref<16x128xf32, #tpu.memory_space<vmem>>, vector<16x128xf32>
    tpu.vector_store %arg7[%c0_6, %c0_7], %7 {strides = array<i32>} : memref<16x128xf32, #tpu.memory_space<vmem>>, vector<16x128xf32>,
    %c0_i32_8 = arith.constant 0 : i32
    %9 = arith.cmpi eq, %arg2, %c0_i32_8 : i32
    %10 = arith.extui %9 : i1 to i32
    %c0_i32_9 = arith.constant 0 : i32
    %11 = arith.cmpi ne, %10, %c0_i32_9 : i32
    scf.if %11 {
      %c0_10 = arith.constant 0 : index
      %c0_11 = arith.constant 0 : index
      %12 = vector.load %arg7[%c0_10, %c0_11] : memref<16x128xf32, #tpu.memory_space<vmem>>, vector<16x128xf32>
      %c0_12 = arith.constant 0 : index
      %c0_13 = arith.constant 0 : index
      %13 = vector.load %arg5[%c0_12, %c0_13] : memref<1x128xf32, #tpu.memory_space<vmem>>, vector<1x128xf32>
      %14 = vector.broadcast %13 : vector<1x128xf32> to vector<16x128xf32>
      %15 = arith.addf %12, %14 : vector<16x128xf32>
      %c0_14 = arith.constant 0 : index
      %c0_15 = arith.constant 0 : index
      %16 = vector.load %arg6[%c0_14, %c0_15] : memref<16x128xf32, #tpu.memory_space<vmem>>, vector<16x128xf32>
      tpu.vector_store %arg6[%c0_14, %c0_15], %15 {strides = array<i32>} : memref<16x128xf32, #tpu.memory_space<vmem>>, vector<16x128xf32>,
    } else {
    }
    return
  }
  func.func @transform_0(%arg0: i32, %arg1: i32, %arg2: i32) -> (i32, i32) {
    %c0_i32 = arith.constant 0 : i32
    return %arg0, %arg2 : i32, i32
  }
  func.func @transform_1(%arg0: i32, %arg1: i32, %arg2: i32) -> (i32, i32) {
    %c0_i32 = arith.constant 0 : i32
    return %arg2, %arg1 : i32, i32
  }
  func.func @transform_2(%arg0: i32, %arg1: i32, %arg2: i32) -> (i32, i32) {
    %c0_i32 = arith.constant 0 : i32
    %c0_i32_0 = arith.constant 0 : i32
    return %c0_i32, %arg1 : i32, i32
  }
  func.func @transform_3(%arg0: i32, %arg1: i32, %arg2: i32) -> (i32, i32) {
    %c0_i32 = arith.constant 0 : i32
    return %arg0, %arg1 : i32, i32
  }
}

module attributes {stable_mosaic.version = 11 : i64} {
  func.func @_ffn_kernel(%arg0: i32, %arg1: i32, %arg2: memref<16x128xf32, #tpu.memory_space<vmem>>, %arg3: memref<128x256xf32, #tpu.memory_space<vmem>>, %arg4: memref<1x256xf32, #tpu.memory_space<vmem>>, %arg5: memref<256x128xf32, #tpu.memory_space<vmem>>, %arg6: memref<1x128xf32, #tpu.memory_space<vmem>>, %arg7: memref<16x128xf32, #tpu.memory_space<vmem>>, %arg8: memref<16x128xf32, #tpu.memory_space<vmem>>) attributes {dimension_semantics = [#tpu.dimension_semantics<parallel>, #tpu.dimension_semantics<arbitrary>], iteration_bounds = array<i64: 1, 2>, scalar_prefetch = 0 : i64, scratch_operands = 1 : i64, tpu.core_type = #tpu.core_type<tc>, window_params = [{transform_indices = @transform_0, window_bounds = array<i64: 16, 128>}, {transform_indices = @transform_1, window_bounds = array<i64: 128, 256>}, {transform_indices = @transform_2, window_bounds = array<i64: 1, 256>}, {transform_indices = @transform_3, window_bounds = array<i64: 256, 128>}, {pipeline_mode = #tpu.pipeline_mode<synchronous>, transform_indices = @transform_4, window_bounds = array<i64: 1, 128>}, {transform_indices = @transform_5, window_bounds = array<i64: 16, 128>}]} {
    %c0_i32 = arith.constant 0 : i32
    %0 = arith.cmpi eq, %arg1, %c0_i32 : i32
    %1 = arith.extui %0 : i1 to i32
    %c0_i32_0 = arith.constant 0 : i32
    %2 = arith.cmpi ne, %1, %c0_i32_0 : i32
    scf.if %2 {
      %cst_15 = arith.constant 0.000000e+00 : f32
      %19 = vector.broadcast %cst_15 : f32 to vector<16x128xf32>
      %c0_16 = arith.constant 0 : index
      %c0_17 = arith.constant 0 : index
      %20 = vector.load %arg8[%c0_16, %c0_17] : memref<16x128xf32, #tpu.memory_space<vmem>>, vector<16x128xf32>
      tpu.vector_store %arg8[%c0_16, %c0_17], %19 {strides = array<i32>} : memref<16x128xf32, #tpu.memory_space<vmem>>, vector<16x128xf32>,
    } else {
    }
    %c0 = arith.constant 0 : index
    %c0_1 = arith.constant 0 : index
    %3 = vector.load %arg2[%c0, %c0_1] : memref<16x128xf32, #tpu.memory_space<vmem>>, vector<16x128xf32>
    %c0_2 = arith.constant 0 : index
    %c0_3 = arith.constant 0 : index
    %4 = vector.load %arg3[%c0_2, %c0_3] : memref<128x256xf32, #tpu.memory_space<vmem>>, vector<128x256xf32>
    %cst = arith.constant dense<0.000000e+00> : vector<16x256xf32>
    %5 = tpu.matmul %3, %4, %cst {dimension_numbers = #tpu.dot_dimension_numbers<[1], [0], [0], [1], [0, 0, 1, 1], [], []>} : vector<16x128xf32>, vector<128x256xf32>, vector<16x256xf32> -> vector<16x256xf32>
    %c0_4 = arith.constant 0 : index
    %c0_5 = arith.constant 0 : index
    %6 = vector.load %arg4[%c0_4, %c0_5] : memref<1x256xf32, #tpu.memory_space<vmem>>, vector<1x256xf32>
    %7 = vector.broadcast %6 : vector<1x256xf32> to vector<16x256xf32>
    %8 = arith.addf %5, %7 : vector<16x256xf32>
    %cst_6 = arith.constant 0.000000e+00 : f32
    %9 = vector.broadcast %cst_6 : f32 to vector<16x256xf32>
    %10 = arith.maximumf %8, %9 : vector<16x256xf32>
    %c0_7 = arith.constant 0 : index
    %c0_8 = arith.constant 0 : index
    %11 = vector.load %arg8[%c0_7, %c0_8] : memref<16x128xf32, #tpu.memory_space<vmem>>, vector<16x128xf32>
    %c0_9 = arith.constant 0 : index
    %c0_10 = arith.constant 0 : index
    %12 = vector.load %arg5[%c0_9, %c0_10] : memref<256x128xf32, #tpu.memory_space<vmem>>, vector<256x128xf32>
    %cst_11 = arith.constant dense<0.000000e+00> : vector<16x128xf32>
    %13 = tpu.matmul %10, %12, %cst_11 {dimension_numbers = #tpu.dot_dimension_numbers<[1], [0], [0], [1], [0, 0, 1, 1], [], []>} : vector<16x256xf32>, vector<256x128xf32>, vector<16x128xf32> -> vector<16x128xf32>
    %14 = arith.addf %11, %13 : vector<16x128xf32>
    %c0_12 = arith.constant 0 : index
    %c0_13 = arith.constant 0 : index
    %15 = vector.load %arg8[%c0_12, %c0_13] : memref<16x128xf32, #tpu.memory_space<vmem>>, vector<16x128xf32>
    tpu.vector_store %arg8[%c0_12, %c0_13], %14 {strides = array<i32>} : memref<16x128xf32, #tpu.memory_space<vmem>>, vector<16x128xf32>,
    %c1_i32 = arith.constant 1 : i32
    %16 = arith.cmpi eq, %arg1, %c1_i32 : i32
    %17 = arith.extui %16 : i1 to i32
    %c0_i32_14 = arith.constant 0 : i32
    %18 = arith.cmpi ne, %17, %c0_i32_14 : i32
    scf.if %18 {
      %c0_15 = arith.constant 0 : index
      %c0_16 = arith.constant 0 : index
      %19 = vector.load %arg8[%c0_15, %c0_16] : memref<16x128xf32, #tpu.memory_space<vmem>>, vector<16x128xf32>
      %c0_17 = arith.constant 0 : index
      %c0_18 = arith.constant 0 : index
      %20 = vector.load %arg6[%c0_17, %c0_18] : memref<1x128xf32, #tpu.memory_space<vmem>>, vector<1x128xf32>
      %21 = vector.broadcast %20 : vector<1x128xf32> to vector<16x128xf32>
      %22 = arith.addf %19, %21 : vector<16x128xf32>
      %c0_19 = arith.constant 0 : index
      %c0_20 = arith.constant 0 : index
      %23 = vector.load %arg7[%c0_19, %c0_20] : memref<16x128xf32, #tpu.memory_space<vmem>>, vector<16x128xf32>
      tpu.vector_store %arg7[%c0_19, %c0_20], %22 {strides = array<i32>} : memref<16x128xf32, #tpu.memory_space<vmem>>, vector<16x128xf32>,
    } else {
    }
    return
  }
  func.func @transform_0(%arg0: i32, %arg1: i32) -> (i32, i32) {
    %c0_i32 = arith.constant 0 : i32
    %c0_i32_0 = arith.constant 0 : i32
    return %arg0, %c0_i32 : i32, i32
  }
  func.func @transform_1(%arg0: i32, %arg1: i32) -> (i32, i32) {
    %c0_i32 = arith.constant 0 : i32
    %c0_i32_0 = arith.constant 0 : i32
    return %c0_i32, %arg1 : i32, i32
  }
  func.func @transform_2(%arg0: i32, %arg1: i32) -> (i32, i32) {
    %c0_i32 = arith.constant 0 : i32
    %c0_i32_0 = arith.constant 0 : i32
    return %c0_i32, %arg1 : i32, i32
  }
  func.func @transform_3(%arg0: i32, %arg1: i32) -> (i32, i32) {
    %c0_i32 = arith.constant 0 : i32
    %c0_i32_0 = arith.constant 0 : i32
    return %arg1, %c0_i32 : i32, i32
  }
  func.func @transform_4(%arg0: i32, %arg1: i32) -> (i32, i32) {
    %c0_i32 = arith.constant 0 : i32
    %c0_i32_0 = arith.constant 0 : i32
    %c0_i32_1 = arith.constant 0 : i32
    return %c0_i32, %c0_i32_0 : i32, i32
  }
  func.func @transform_5(%arg0: i32, %arg1: i32) -> (i32, i32) {
    %c0_i32 = arith.constant 0 : i32
    %c0_i32_0 = arith.constant 0 : i32
    return %arg0, %c0_i32 : i32, i32
  }
}

</mosaic_0001>

<bundles_post_ra>
// kernel: transformer_lm.32
= control target key start
LH: loop header
LB: loop body
LE: loop exit
PB: predicated region body
PF: predicated region fallthrough
CT: control target
= control target key end

     0   :  { %s122_s0 = inlined_call_operand.vmem [shape: f32[16,128], index: 0, kind: input, shape index: {}]   ;;  %s123_s1 = inlined_call_operand.vmem [shape: f32[1,128], index: 1, kind: input, shape index: {}]   ;;  %s124_s2 = inlined_call_operand.vmem [shape: f32[1,128], index: 2, kind: input, shape index: {}]   ;;  %s125_s3 = inlined_call_operand.vmem [shape: f32[16,128], index: 3, kind: output, shape index: {}]  }
   0x1   :  { %v14_v0 = vld [vmem:[%s122_s0] sm:$0xff]  ;;  %v15_v2 = vld [vmem:[%s122_s0 + $0x8] sm:$0xff] }
   0x2   :  { %16 = vadd.xlane.f32.xlu0 %v14_v0  ;;  %v20_v1 = vmul.f32 %v14_v0, %v14_v0  ;;  %v21_v3 = vmul.f32 %v15_v2, %v15_v2  ;;  %v78_v27 = vld [vmem:[%s123_s1] ss:$0 sm:$0xff] }
   0x3   :  { %v79_v30 = vld [vmem:[%s124_s2] ss:$0 sm:$0xff] }
   0x4   :  { %22 = vadd.xlane.f32.xlu1 %v20_v1 }
   0xa   :  { %18 = vadd.xlane.f32.xlu0 %v15_v2 }
   0xc   :  { %24 = vadd.xlane.f32.xlu1 %v21_v3 }
  0x75   :  { %v17_v4 = vpop.xlane.xlu0 %16 }
  0x76   :  { %v26_v5 = vmul.f32 0.007936508, %v17_v4 }
  0x77   :  { %v23_v6 = vpop.xlane.xlu1 %22 }
  0x78   :  { %v30_v7 = vmul.f32 %v26_v5, %v26_v5  ;;  %v28_v8 = vmul.f32 0.007936508, %v23_v6  ;;  %v56_v26 = vsub.f32 %v14_v0, %v26_v5 }
  0x7a   :  { %v32_v9 = vsub.f32 %v28_v8, %v30_v7 }
  0x7c   :  { %v34_v10 = vadd.f32 1e-05, %v32_v9 }
  0x7d   :  { %v19_v11 = vpop.xlane.xlu0 %18 }
  0x7e   :  { %80 = vrsqrt.f32 %v34_v10  ;;  %v27_v12 = vmul.f32 0.007936508, %v19_v11  ;;  %vm42_vm1 = vweird.f32 %v34_v10 }
  0x7f   :  { %v25_v13 = vpop.xlane.xlu1 %24 }
  0x80   :  { %v31_v14 = vmul.f32 %v27_v12, %v27_v12  ;;  %v29_v15 = vmul.f32 0.007936508, %v25_v13  ;;  %v57_v37 = vsub.f32 %v15_v2, %v27_v12 }
  0x82   :  { %v33_v16 = vsub.f32 %v29_v15, %v31_v14 }
  0x84   :  { %v81_v17 = vpop.eup %80  ;;  %v35_v18 = vadd.f32 1e-05, %v33_v16 }
  0x85   :  { %v37_v19 = vmul.f32 %v81_v17, %v34_v10  ;;  %vm43_vm0 = vweird.f32 %v81_v17 }
  0x86   :  { %82 = vrsqrt.f32 %v35_v18  ;;  %vm44_vm2 = vmor %vm42_vm1, %vm43_vm0  ;;  %vm52_vm4 = vweird.f32 %v35_v18 }
  0x87   :  { %v38_v20 = vmul.f32 %v81_v17, %v37_v19 }
  0x89   :  { %v39_v21 = vmul.f32 0.5, %v38_v20 }
  0x8b   :  { %v40_v22 = vsub.f32 1.5, %v39_v21 }
  0x8c   :  { %v83_v23 = vpop.eup %82 }
  0x8d   :  { %v41_v24 = vmul.f32 %v81_v17, %v40_v22  ;;  %v47_v25 = vmul.f32 %v83_v23, %v35_v18  ;;  %vm53_vm3 = vweird.f32 %v83_v23 }
  0x8e   :  { %vm54_vm5 = vmor %vm52_vm4, %vm53_vm3 }
  0x8f   :  { %v45_v28 = vsel %vm44_vm2, %v81_v17, %v41_v24  ;;  %v48_v29 = vmul.f32 %v83_v23, %v47_v25 }
  0x90   :  { %v58_v31 = vmul.f32 %v56_v26, %v45_v28 }
  0x91   :  { %v49_v32 = vmul.f32 0.5, %v48_v29 }
  0x92   :  { %v64_v33 = vmul.f32 %v78_v27, %v58_v31 }
  0x93   :  { %v50_v34 = vsub.f32 1.5, %v49_v32 }
  0x94   :  { %v70_v35 = vadd.f32 %v79_v30, %v64_v33 }
  0x95   :  { %v51_v36 = vmul.f32 %v83_v23, %v50_v34 }
  0x96   :  { %72 = vst [vmem:[%s125_s3] sm:$0xff] %v70_v35 }
  0x97   :  { %v55_v38 = vsel %vm54_vm5, %v83_v23, %v51_v36 }
  0x98   :  { %v59_v39 = vmul.f32 %v57_v37, %v55_v38 }
  0x9a   :  { %v65_v40 = vmul.f32 %v78_v27, %v59_v39 }
  0x9c   :  { %v71_v41 = vadd.f32 %v79_v30, %v65_v40 }
  0x9e   :  { %73 = vst [vmem:[%s125_s3 + $0x8] sm:$0xff] %v71_v41 }

// kernel: transformer_lm.34
= control target key start
LH: loop header
LB: loop body
LE: loop exit
PB: predicated region body
PF: predicated region fallthrough
CT: control target
= control target key end

     0   :  { %s417_s12 = smov 0   ;;  %s452_s0 = inlined_call_operand.vmem [shape: f32[12,8,21], index: 0, kind: input, shape index: {}]   ;;  %s453_s1 = inlined_call_operand.vmem [shape: f32[12,8,21], index: 1, kind: input, shape index: {}]   ;;  %s454_s2 = inlined_call_operand.vmem [shape: f32[12,8,21], index: 2, kind: input, shape index: {}]   ;;  %s455_s3 = inlined_call_operand.vmem [shape: f32[12,8,21], index: 3, kind: output, shape index: {}]  }
   0x1 LB: > { %s363_s13 = sadd.s32 4294967295, %s395_s12   ;;  %p367_p0 = scmp.ge.s32.totalorder %s395_s12, 1  ;;  %s395_s12 = sphi %s417_s12, %s13_s12  }
   0x2   : > { %p154_p1 = scmp.lt.s32.totalorder %s395_s12, 13 }
   0x4   : > { %p155_p2 = pnand %p367_p0, %p154_p1 }
   0x5   : > { %p184_p3 = scmp.lt.s32.totalorder (!%p155_p2), %s363_s13, 11 }
   0x6   : > { %158 = sbr.rel (%p155_p2) target bundleno = 538 (0x21a), region = 32 }
   0xb   : > { %s457_s13 = smov (!%p184_p3, %s363_s13), 11  ;;  %vm203_vm0 = vcmask 171008   ;;  %v231_v2 = vlaneseq  ;;  %vm237_vm2 = vcmask 64512  }
   0xc   : > { %s425_s14 = sshll.u32 %s457_s13, 3 }
   0xd   : > { %s191_s17 = scalar_lea.vmem %s453_s1, %s425_s14  ;;  %s187_s20 = scalar_lea.vmem %s452_s0, %s425_s14  ;;  %v232_v3 = vshrl.u32 %v231_v2, 7  ;;  %v234_v4 = vand.u32 127, %v231_v2 }
   0xe   : > { %v201_v0 = vld [vmem:[%s191_s17] sm:$0xff]  ;;  %s195_s23 = scalar_lea.vmem %s454_s2, %s425_s14  ;;  %s199_s26 = scalar_lea.vmem %s455_s3, %s425_s14 }
   0xf   : > { %372 = vmatpush.xpose.msk.msra.mxu0 %vm203_vm0, %v201_v0  ;;  %v200_v1 = vld [vmem:[%s187_s20] sm:$0xff]  ;;  %vm235_vm1 = vcmp.le.s32.totalorder %v234_v4, %v232_v3 }
  0x10   : > { %v202_v14 = vld [vmem:[%s195_s23] sm:$0xff] }
  0x11   : > { %280 = vmatpush.msra.mxu1 %v202_v14 }
  0x12   : > { %373 = vmatmul.msk.f32.vlgmr.msra.gmra.mxu0 %vm203_vm0, %v200_v1 }
  0x8f   : > { %v227_v5 = vpop.f32.mrf.mxu0 }
  0x90   : > { %v230_v6 = vmul.f32 0.089087084, %v227_v5 }
  0x92   : > { %v236_v7 = vsel %vm235_vm1, %v230_v6, -1e+30 }
  0x93   : > { %v238_v8 = vsel %vm237_vm2, %v236_v7, -inf }
  0x94   : > { %239 = vmax.xlane.f32.xlu0 %v238_v8 }
 0x107   : > { %v240_v9 = vpop.xlane.xlu0 %239 }
 0x108   : > { %v241_v10 = vsub.f32 %v236_v7, %v240_v9 }
 0x10a   : > { %v242_v11 = vmul.f32 1.442695, %v241_v10 }
 0x10c   : > { %385 = vpow2.f32 %v242_v11 }
 0x112   : > { %v386_v12 = vpop.eup %385 }
 0x113   : > { %v244_v13 = vsel %vm237_vm2, %v386_v12, 0.0 }
 0x114   : > { %245 = vadd.xlane.f32.xlu0 %v244_v13 }
 0x187   : > { %v246_v15 = vpop.xlane.xlu0 %245 }
 0x188   : > { %387 = vrcp.f32 %v246_v15  ;;  %v258_v19 = vand.u32 2147483648, %v246_v15  ;;  %v256_v21 = vand.u32 2147483647, %v246_v15  ;;  %vm252_vm4 = vweird.f32 %v246_v15 }
 0x18a   : > { %v259_v23 = vor.u32 1.1754944e-38, %v258_v19  ;;  %vm257_vm6 = vcmp.eq.f32.partialorder %v256_v21, 8.507059e+37 }
 0x18e   : > { %v388_v16 = vpop.eup %387 }
 0x18f   : > { %v248_v17 = vmul.f32 %v388_v16, %v246_v15  ;;  %vm253_vm3 = vweird.f32 %v388_v16 }
 0x190   : > { %vm254_vm5 = vmor %vm252_vm4, %vm253_vm3 }
 0x191   : > { %v249_v18 = vsub.f32 1.0, %v248_v17 }
 0x193   : > { %v250_v20 = vmul.f32 %v388_v16, %v249_v18 }
 0x195   : > { %v251_v22 = vadd.f32 %v388_v16, %v250_v20 }
 0x197   : > { %v255_v24 = vsel %vm254_vm5, %v388_v16, %v251_v22 }
 0x198   : > { %v260_v25 = vsel %vm257_vm6, %v259_v23, %v255_v24 }
 0x199   : > { %v261_v26 = vmul.f32 %v386_v12, %v260_v25 }
 0x19b   : > { %374 = vmatmul.msk.f32.vlgmr.msra.gmra.mxu1 %vm237_vm2, %v261_v26 }
 0x218   : > { %v282_v27 = vpop.f32.mrf.mxu1 }
 0x219   : > { %285 = vst.msk [vmem:[%s199_s26] sm:$0xff] %vm203_vm0, %v282_v27 }
 0x21a PF: > { %s13_s12 = sadd.s32 1, %s395_s12  }
 0x21b   : > { %p10_p4 = scmp.ge.s32.totalorder %s13_s12, 14  }
 0x21d   :  { %12 = sbr.rel (!%p10_p4) target bundleno = 1 (0x1), region = 68 }

// kernel: transformer_lm.33
= control target key start
LH: loop header
LB: loop body
LE: loop exit
PB: predicated region body
PF: predicated region fallthrough
CT: control target
= control target key end

     0   :  { %s401_s1 = inlined_call_operand.vmem [shape: f32[128,384], index: 1, kind: input, shape index: {}]   ;;  %s402_s0 = inlined_call_operand.vmem [shape: f32[16,128], index: 0, kind: input, shape index: {}]   ;;  %s403_s2 = inlined_call_operand.vmem [shape: f32[1,384], index: 2, kind: input, shape index: {}]   ;;  %s404_s3 = inlined_call_operand.vmem [shape: f32[16,384], index: 3, kind: output, shape index: {}]  }
   0x1   :  { %v79_v0 = vld [vmem:[%s401_s1 + $0x178] sm:$0xff]  ;;  %v76_v1 = vld [vmem:[%s401_s1 + $0x160] sm:$0xff]  ;;  %v78_v2 = vld [vmem:[%s401_s1 + $0x170] sm:$0xff] }
   0x2   :  { %126 = vmatpush.msra.mxu2 %v79_v0  ;;  %v77_v3 = vld [vmem:[%s401_s1 + $0x168] sm:$0xff]  ;;  %103 = vmatpush.msra.mxu1 %v78_v2  ;;  %v75_v5 = vld [vmem:[%s401_s1 + $0x158] sm:$0xff]  ;;  %v74_v6 = vld [vmem:[%s401_s1 + $0x150] sm:$0xff] }
   0x3   :  { %v73_v4 = vld [vmem:[%s401_s1 + $0x148] sm:$0xff]  ;;  %194 = vmatpush.msra.mxu3 %v77_v3  ;;  %v72_v7 = vld [vmem:[%s401_s1 + $0x140] sm:$0xff]  ;;  %v71_v8 = vld [vmem:[%s401_s1 + $0x138] sm:$0xff]  ;;  %80 = vmatpush.msra.mxu0 %v77_v3 }
   0x4   :  { %127 = vmatpush.msra.mxu2 %v76_v1  ;;  %v70_v9 = vld [vmem:[%s401_s1 + $0x130] sm:$0xff]  ;;  %104 = vmatpush.msra.mxu1 %v75_v5  ;;  %v69_v10 = vld [vmem:[%s401_s1 + $0x128] sm:$0xff]  ;;  %v68_v11 = vld [vmem:[%s401_s1 + $0x120] sm:$0xff] }
   0x5   :  { %195 = vmatpush.msra.mxu3 %v74_v6  ;;  %81 = vmatpush.msra.mxu0 %v74_v6  ;;  %v67_v12 = vld [vmem:[%s401_s1 + $0x118] sm:$0xff]  ;;  %v66_v13 = vld [vmem:[%s401_s1 + $0x110] sm:$0xff]  ;;  %v65_v14 = vld [vmem:[%s401_s1 + $0x108] sm:$0xff] }
   0x6   :  { %128 = vmatpush.msra.mxu2 %v73_v4  ;;  %105 = vmatpush.msra.mxu1 %v72_v7  ;;  %v64_v15 = vld [vmem:[%s401_s1 + $0x100] sm:$0xff]  ;;  %v63_v16 = vld [vmem:[%s401_s1 + $0xf8] sm:$0xff]  ;;  %v62_v17 = vld [vmem:[%s401_s1 + $0xf0] sm:$0xff] }
   0x7   :  { %196 = vmatpush.msra.mxu3 %v71_v8  ;;  %82 = vmatpush.msra.mxu0 %v71_v8  ;;  %v61_v18 = vld [vmem:[%s401_s1 + $0xe8] sm:$0xff]  ;;  %v60_v19 = vld [vmem:[%s401_s1 + $0xe0] sm:$0xff]  ;;  %v59_v20 = vld [vmem:[%s401_s1 + $0xd8] sm:$0xff] }
   0x8   :  { %129 = vmatpush.msra.mxu2 %v70_v9  ;;  %106 = vmatpush.msra.mxu1 %v69_v10  ;;  %v58_v21 = vld [vmem:[%s401_s1 + $0xd0] sm:$0xff]  ;;  %v57_v22 = vld [vmem:[%s401_s1 + $0xc8] sm:$0xff]  ;;  %v56_v23 = vld [vmem:[%s401_s1 + $0xc0] sm:$0xff] }
   0x9   :  { %197 = vmatpush.msra.mxu3 %v68_v11  ;;  %83 = vmatpush.msra.mxu0 %v68_v11  ;;  %v55_v24 = vld [vmem:[%s401_s1 + $0xb8] sm:$0xff]  ;;  %v54_v25 = vld [vmem:[%s401_s1 + $0xb0] sm:$0xff]  ;;  %v53_v26 = vld [vmem:[%s401_s1 + $0xa8] sm:$0xff] }
   0xa   :  { %130 = vmatpush.msra.mxu2 %v67_v12  ;;  %107 = vmatpush.msra.mxu1 %v66_v13  ;;  %v52_v27 = vld [vmem:[%s401_s1 + $0xa0] sm:$0xff]  ;;  %v51_v28 = vld [vmem:[%s401_s1 + $0x98] sm:$0xff]  ;;  %v50_v29 = vld [vmem:[%s401_s1 + $0x90] sm:$0xff] }
   0xb   :  { %198 = vmatpush.msra.mxu3 %v65_v14  ;;  %84 = vmatpush.msra.mxu0 %v65_v14  ;;  %v49_v30 = vld [vmem:[%s401_s1 + $0x88] sm:$0xff]  ;;  %v48_v31 = vld [vmem:[%s401_s1 + $0x80] sm:$0xff]  ;;  %v47_v32 = vld [vmem:[%s401_s1 + $0x78] sm:$0xff] }
   0xc   :  { %131 = vmatpush.msra.mxu2 %v64_v15  ;;  %108 = vmatpush.msra.mxu1 %v63_v16  ;;  %v46_v33 = vld [vmem:[%s401_s1 + $0x70] sm:$0xff]  ;;  %v45_v34 = vld [vmem:[%s401_s1 + $0x68] sm:$0xff]  ;;  %v44_v35 = vld [vmem:[%s401_s1 + $0x60] sm:$0xff] }
   0xd   :  { %199 = vmatpush.msra.mxu3 %v62_v17  ;;  %85 = vmatpush.msra.mxu0 %v62_v17  ;;  %v43_v36 = vld [vmem:[%s401_s1 + $0x58] sm:$0xff]  ;;  %v42_v37 = vld [vmem:[%s401_s1 + $0x50] sm:$0xff]  ;;  %v41_v38 = vld [vmem:[%s401_s1 + $0x48] sm:$0xff] }
   0xe   :  { %132 = vmatpush.msra.mxu2 %v61_v18  ;;  %109 = vmatpush.msra.mxu1 %v60_v19  ;;  %v40_v39 = vld [vmem:[%s401_s1 + $0x40] sm:$0xff]  ;;  %v39_v40 = vld [vmem:[%s401_s1 + $0x38] sm:$0xff]  ;;  %v38_v41 = vld [vmem:[%s401_s1 + $0x30] sm:$0xff] }
   0xf   :  { %200 = vmatpush.msra.mxu3 %v59_v20  ;;  %86 = vmatpush.msra.mxu0 %v59_v20  ;;  %v37_v42 = vld [vmem:[%s401_s1 + $0x28] sm:$0xff]  ;;  %v36_v43 = vld [vmem:[%s401_s1 + $0x20] sm:$0xff]  ;;  %v35_v44 = vld [vmem:[%s401_s1 + $0x18] sm:$0xff] }
  0x10   :  { %133 = vmatpush.msra.mxu2 %v58_v21  ;;  %110 = vmatpush.msra.mxu1 %v57_v22  ;;  %v34_v45 = vld [vmem:[%s401_s1 + $0x10] sm:$0xff]  ;;  %v30_v46 = vld [vmem:[%s402_s0] sm:$0xff]  ;;  %v33_v47 = vld [vmem:[%s401_s1 + $0x8] sm:$0xff] }
  0x11   :  { %201 = vmatpush.msra.mxu3 %v56_v23  ;;  %87 = vmatpush.msra.mxu0 %v56_v23  ;;  %v32_v48 = vld [vmem:[%s401_s1] sm:$0xff]  ;;  %v31_v49 = vld [vmem:[%s402_s0 + $0x8] sm:$0xff] }
  0x12   :  { %134 = vmatpush.msra.mxu2 %v55_v24  ;;  %111 = vmatpush.msra.mxu1 %v54_v25  ;;  %v170_v50 = vld [vmem:[%s403_s2] sm:$0x7] }
  0x13   :  { %202 = vmatpush.msra.mxu3 %v53_v26  ;;  %88 = vmatpush.msra.mxu0 %v53_v26  ;;  %v173_v51 = vperm.slane %v170_v50, 1  ;;  %v172_v52 = vperm.slane %v170_v50, 0  ;;  %v174_v55 = vperm.slane %v170_v50, 2 }
  0x14   :  { %135 = vmatpush.msra.mxu2 %v52_v27  ;;  %112 = vmatpush.msra.mxu1 %v51_v28 }
  0x15   :  { %203 = vmatpush.msra.mxu3 %v50_v29  ;;  %89 = vmatpush.msra.mxu0 %v50_v29 }
  0x16   :  { %136 = vmatpush.msra.mxu2 %v49_v30  ;;  %113 = vmatpush.msra.mxu1 %v48_v31 }
  0x17   :  { %204 = vmatpush.msra.mxu3 %v47_v32  ;;  %90 = vmatpush.msra.mxu0 %v47_v32 }
  0x18   :  { %137 = vmatpush.msra.mxu2 %v46_v33  ;;  %114 = vmatpush.msra.mxu1 %v45_v34 }
  0x19   :  { %205 = vmatpush.msra.mxu3 %v44_v35  ;;  %91 = vmatpush.msra.mxu0 %v44_v35 }
  0x1a   :  { %138 = vmatpush.msra.mxu2 %v43_v36  ;;  %115 = vmatpush.msra.mxu1 %v42_v37 }
  0x1b   :  { %206 = vmatpush.msra.mxu3 %v41_v38  ;;  %92 = vmatpush.msra.mxu0 %v41_v38 }
  0x1c   :  { %139 = vmatpush.msra.mxu2 %v40_v39  ;;  %116 = vmatpush.msra.mxu1 %v39_v40 }
  0x1d   :  { %207 = vmatpush.msra.mxu3 %v38_v41  ;;  %93 = vmatpush.msra.mxu0 %v38_v41 }
  0x1e   :  { %140 = vmatpush.msra.mxu2 %v37_v42  ;;  %117 = vmatpush.msra.mxu1 %v36_v43 }
  0x1f   :  { %208 = vmatpush.msra.mxu3 %v35_v44  ;;  %94 = vmatpush.msra.mxu0 %v35_v44 }
  0x20   :  { %141 = vmatpush.msra.mxu2 %v34_v45  ;;  %118 = vmatpush.msra.mxu1 %v33_v47 }
  0x21   :  { %142 = vmatmul.f32.vlgmr.msra.gmra.mxu2 %v30_v46  ;;  %119 = vmatmul.f32.vlgmr.msra.gmra.mxu1 %v30_v46 }
  0x22   :  { %209 = vmatpush.msra.mxu3 %v32_v48  ;;  %95 = vmatpush.msra.mxu0 %v32_v48 }
  0x23   :  { %99 = vmatmul.f32.vlgmr.msra.gmra.mxu3 %v31_v49  ;;  %96 = vmatmul.f32.vlgmr.msra.gmra.mxu0 %v30_v46 }
  0x29   :  { %145 = vmatmul.f32.gmra.mxu2 %v31_v49  ;;  %122 = vmatmul.f32.gmra.mxu1 %v31_v49 }
  0x9e   :  { %v120_v53 = vpop.f32.mrf.mxu1 }
  0x9f   :  { %v179_v54 = vadd.f32 %v173_v51, %v120_v53 }
  0xa0   :  { %v97_v56 = vpop.f32.mrf.mxu0 }
  0xa1   :  { %185 = vst [vmem:[%s404_s3 + $0x8] sm:$0xff] %v179_v54  ;;  %v178_v57 = vadd.f32 %v172_v52, %v97_v56 }
  0xa3   :  { %184 = vst [vmem:[%s404_s3] sm:$0xff] %v178_v57 }
  0xa4   :  { %v143_v58 = vpop.f32.mrf.mxu2 }
  0xa5   :  { %v180_v59 = vadd.f32 %v174_v55, %v143_v58 }
  0xa6   :  { %v100_v60 = vpop.f32.mrf.mxu3  ;;  %v123_v62 = vpop.f32.mrf.mxu1 }
  0xa7   :  { %186 = vst [vmem:[%s404_s3 + $0x10] sm:$0xff] %v180_v59  ;;  %v181_v61 = vadd.f32 %v172_v52, %v100_v60  ;;  %v182_v63 = vadd.f32 %v173_v51, %v123_v62 }
  0xa9   :  { %187 = vst [vmem:[%s404_s3 + $0x18] sm:$0xff] %v181_v61 }
  0xaa   :  { %188 = vst [vmem:[%s404_s3 + $0x20] sm:$0xff] %v182_v63 }
  0xac   :  { %v146_v0 = vpop.f32.mrf.mxu2 }
  0xad   :  { %v183_v1 = vadd.f32 %v174_v55, %v146_v0 }
  0xaf   :  { %189 = vst [vmem:[%s404_s3 + $0x28] sm:$0xff] %v183_v1 }

// kernel: transformer_lm.35
= control target key start
LH: loop header
LB: loop body
LE: loop exit
PB: predicated region body
PF: predicated region fallthrough
CT: control target
= control target key end

     0   :  { %s184_s1 = inlined_call_operand.vmem [shape: f32[128,128], index: 1, kind: input, shape index: {}]   ;;  %s185_s2 = inlined_call_operand.vmem [shape: f32[1,128], index: 2, kind: input, shape index: {}]   ;;  %s186_s0 = inlined_call_operand.vmem [shape: f32[16,128], index: 0, kind: input, shape index: {}]   ;;  %s187_s3 = inlined_call_operand.vmem [shape: f32[16,128], index: 3, kind: output, shape index: {}]  }
   0x1   :  { %v39_v0 = vld [vmem:[%s184_s1 + $0x78] sm:$0xff]  ;;  %v38_v1 = vld [vmem:[%s184_s1 + $0x70] sm:$0xff]  ;;  %v37_v2 = vld [vmem:[%s184_s1 + $0x68] sm:$0xff] }
   0x2   :  { %40 = vmatpush.msra.mxu0 %v39_v0  ;;  %84 = vmatpush.msra.mxu1 %v39_v0  ;;  %v36_v3 = vld [vmem:[%s184_s1 + $0x60] sm:$0xff]  ;;  %v35_v4 = vld [vmem:[%s184_s1 + $0x58] sm:$0xff]  ;;  %v34_v5 = vld [vmem:[%s184_s1 + $0x50] sm:$0xff] }
   0x3   :  { %v33_v6 = vld [vmem:[%s184_s1 + $0x48] sm:$0xff]  ;;  %v32_v7 = vld [vmem:[%s184_s1 + $0x40] sm:$0xff]  ;;  %v31_v8 = vld [vmem:[%s184_s1 + $0x38] sm:$0xff] }
   0x4   :  { %41 = vmatpush.msra.mxu0 %v38_v1  ;;  %85 = vmatpush.msra.mxu1 %v38_v1  ;;  %v30_v9 = vld [vmem:[%s184_s1 + $0x30] sm:$0xff]  ;;  %v29_v10 = vld [vmem:[%s184_s1 + $0x28] sm:$0xff]  ;;  %v28_v11 = vld [vmem:[%s184_s1 + $0x20] sm:$0xff] }
   0x5   :  { %v27_v12 = vld [vmem:[%s184_s1 + $0x18] sm:$0xff]  ;;  %v26_v13 = vld [vmem:[%s184_s1 + $0x10] sm:$0xff]  ;;  %v25_v14 = vld [vmem:[%s184_s1 + $0x8] sm:$0xff] }
   0x6   :  { %42 = vmatpush.msra.mxu0 %v37_v2  ;;  %86 = vmatpush.msra.mxu1 %v37_v2  ;;  %v24_v15 = vld [vmem:[%s184_s1] sm:$0xff]  ;;  %v23_v17 = vld [vmem:[%s186_s0 + $0x8] sm:$0xff] }
   0x7   :  { %v22_v16 = vld [vmem:[%s186_s0] sm:$0xff] }
   0x8   :  { %43 = vmatpush.msra.mxu0 %v36_v3  ;;  %87 = vmatpush.msra.mxu1 %v36_v3  ;;  %v100_v18 = vld [vmem:[%s185_s2] ss:$0 sm:$0xff] }
   0xa   :  { %44 = vmatpush.msra.mxu0 %v35_v4  ;;  %88 = vmatpush.msra.mxu1 %v35_v4 }
   0xc   :  { %45 = vmatpush.msra.mxu0 %v34_v5  ;;  %89 = vmatpush.msra.mxu1 %v34_v5 }
   0xe   :  { %46 = vmatpush.msra.mxu0 %v33_v6  ;;  %90 = vmatpush.msra.mxu1 %v33_v6 }
  0x10   :  { %47 = vmatpush.msra.mxu0 %v32_v7  ;;  %91 = vmatpush.msra.mxu1 %v32_v7 }
  0x12   :  { %48 = vmatpush.msra.mxu0 %v31_v8  ;;  %92 = vmatpush.msra.mxu1 %v31_v8 }
  0x14   :  { %49 = vmatpush.msra.mxu0 %v30_v9  ;;  %93 = vmatpush.msra.mxu1 %v30_v9 }
  0x16   :  { %50 = vmatpush.msra.mxu0 %v29_v10  ;;  %94 = vmatpush.msra.mxu1 %v29_v10 }
  0x18   :  { %51 = vmatpush.msra.mxu0 %v28_v11  ;;  %95 = vmatpush.msra.mxu1 %v28_v11 }
  0x1a   :  { %52 = vmatpush.msra.mxu0 %v27_v12  ;;  %96 = vmatpush.msra.mxu1 %v27_v12 }
  0x1c   :  { %53 = vmatpush.msra.mxu0 %v26_v13  ;;  %97 = vmatpush.msra.mxu1 %v26_v13 }
  0x1e   :  { %54 = vmatpush.msra.mxu0 %v25_v14  ;;  %98 = vmatpush.msra.mxu1 %v25_v14 }
  0x20   :  { %55 = vmatpush.msra.mxu0 %v24_v15  ;;  %99 = vmatpush.msra.mxu1 %v24_v15 }
  0x21   :  { %56 = vmatmul.f32.vlgmr.msra.gmra.mxu0 %v22_v16  ;;  %59 = vmatmul.f32.vlgmr.msra.gmra.mxu1 %v23_v17 }
  0x9e   :  { %v57_v19 = vpop.f32.mrf.mxu0  ;;  %v60_v20 = vpop.f32.mrf.mxu1 }
  0x9f   :  { %v76_v21 = vadd.f32 %v100_v18, %v57_v19  ;;  %v77_v22 = vadd.f32 %v100_v18, %v60_v20 }
  0xa1   :  { %78 = vst [vmem:[%s187_s3] sm:$0xff] %v76_v21 }
  0xa2   :  { %79 = vst [vmem:[%s187_s3 + $0x8] sm:$0xff] %v77_v22 }

// kernel: transformer_lm.37
= control target key start
LH: loop header
LB: loop body
LE: loop exit
PB: predicated region body
PF: predicated region fallthrough
CT: control target
= control target key end

     0   :  { %s814_s18 = smov 0   ;;  %s816_s19 = smov 0   ;;  %s1044_s0 = inlined_call_operand.vmem [shape: f32[16,128], index: 0, kind: input, shape index: {}]   ;;  %s1045_s1 = inlined_call_operand.vmem [shape: f32[128,512], index: 1, kind: input, shape index: {}]   ;;  %s1046_s2 = inlined_call_operand.vmem [shape: f32[1,512], index: 2, kind: input, shape index: {}]   ;;  %s1047_s3 = inlined_call_operand.vmem [shape: f32[512,128], index: 3, kind: input, shape index: {}]   ;;  %s1048_s4 = inlined_call_operand.vmem [shape: f32[1,128], index: 4, kind: input, shape index: {}]   ;;  %s1049_s5 = inlined_call_operand.vmem [shape: f32[16,128], index: 5, kind: output, shape index: {}]  }
   0x1   :  { %s818_s20 = smov 0   ;;  %s820_s21 = smov 0  }
   0x2   :  { %s822_s22 = smov 0  }
   0x3 LB: > { %s24_s23 = sadd.s32 1, %s777_s21  ;;  %p67_p1 = scmp.ne.s32.totalorder %s769_s19, %s765_s18  ;;  %s781_s22 = sphi %s822_s22, %s15_s22   ;;  %s777_s21 = sphi %s820_s21, %s1053_s21   ;;  %s773_s20 = sphi %s818_s20, %s1052_s20   ;;  %s769_s19 = sphi %s816_s19, %s1051_s19   ;;  %s765_s18 = sphi %s814_s18, %s1050_s18  }
   0x4   : > { %p25_p0 = scmp.ge.s32.totalorder %s24_s23, 2  ;;  %p68_p2 = scmp.eq.s32.totalorder %s781_s22, 0 }
   0x5   : > { %s60_s25 = sadd.s32 1, %s769_s19  ;;  %p685_p5 = scmp.ge.s32.totalorder %s781_s22, 2 }
   0x6   : > { %s1055_s23 = smov (%p25_p0, %s24_s23), 0  ;;  %p69_p3 = por %p68_p2, %p67_p1 }
   0x7   : > { %s57_s24 = ssub.s32 %s777_s21, %s1055_s23  ;;  %204 = sbr.rel (%p685_p5) target bundleno = 48 (0x30), region = 24 }
   0x8   : > { %p58_p4 = scmp.eq.s32.totalorder %s57_s24, 0 }
   0xa   : > { %s849_s26 = scalar_select %p58_p4, %s769_s19, %s60_s25  }
   0xc   : > { %207 = sbr.rel (!%p69_p3) target bundleno = 48 (0x30), region = 28  ;;  %s209_s27 = sand.u32 (%p69_p3), 1, %s769_s19  }
   0xd   : > { %s700_s28 = sshll.u32 (%p69_p3), %s777_s21, 4  ;;  %s686_s29 = sshll.u32 (%p69_p3), %s209_s27, 8 }
   0xe   : > { %s857_s7 = scalar_lea.vmem (%p69_p3), %s1045_s1, %s700_s28  ;;  %s862_s8 = scalar_lea.vmem (%p69_p3), [#allocation3], %s686_s29 }
   0xf   : > { %v227_v0 = vld [vmem:[%s857_s7] sm:$0xff] (%p69_p3)  ;;  %v229_v1 = vld [vmem:[%s857_s7 + $0x8] sm:$0xff] (%p69_p3) }
  0x10   : > { %v231_v2 = vld [vmem:[%s857_s7 + $0x20] sm:$0xff] (%p69_p3)  ;;  %228 = vst [vmem:[%s862_s8] sm:$0xff] (%p69_p3), %v227_v0  ;;  %v233_v3 = vld [vmem:[%s857_s7 + $0x28] sm:$0xff] (%p69_p3) }
  0x11   : > { %230 = vst [vmem:[%s862_s8 + $0x8] sm:$0xff] %v229_v1  ;;  %v235_v4 = vld [vmem:[%s857_s7 + $0x40] sm:$0xff]  ;;  %v237_v5 = vld [vmem:[%s857_s7 + $0x48] sm:$0xff] }
  0x12   : > { %232 = vst [vmem:[%s862_s8 + $0x10] sm:$0xff] %v231_v2  ;;  %v239_v6 = vld [vmem:[%s857_s7 + $0x60] sm:$0xff]  ;;  %v241_v7 = vld [vmem:[%s857_s7 + $0x68] sm:$0xff] }
  0x13   : > { %234 = vst [vmem:[%s862_s8 + $0x18] sm:$0xff] %v233_v3  ;;  %v243_v8 = vld [vmem:[%s857_s7 + $0x80] sm:$0xff]  ;;  %v245_v9 = vld [vmem:[%s857_s7 + $0x88] sm:$0xff] }
  0x14   : > { %236 = vst [vmem:[%s862_s8 + $0x20] sm:$0xff] %v235_v4  ;;  %v247_v10 = vld [vmem:[%s857_s7 + $0xa0] sm:$0xff]  ;;  %v249_v11 = vld [vmem:[%s857_s7 + $0xa8] sm:$0xff] }
  0x15   : > { %238 = vst [vmem:[%s862_s8 + $0x28] sm:$0xff] %v237_v5  ;;  %v251_v12 = vld [vmem:[%s857_s7 + $0xc0] sm:$0xff]  ;;  %v253_v13 = vld [vmem:[%s857_s7 + $0xc8] sm:$0xff] }
  0x16   : > { %240 = vst [vmem:[%s862_s8 + $0x30] sm:$0xff] %v239_v6  ;;  %v255_v14 = vld [vmem:[%s857_s7 + $0xe0] sm:$0xff]  ;;  %v257_v15 = vld [vmem:[%s857_s7 + $0xe8] sm:$0xff] }
  0x17   : > { %242 = vst [vmem:[%s862_s8 + $0x38] sm:$0xff] %v241_v7  ;;  %v259_v16 = vld [vmem:[%s857_s7 + $0x100] sm:$0xff]  ;;  %v261_v17 = vld [vmem:[%s857_s7 + $0x108] sm:$0xff] }
  0x18   : > { %244 = vst [vmem:[%s862_s8 + $0x40] sm:$0xff] %v243_v8  ;;  %v263_v18 = vld [vmem:[%s857_s7 + $0x120] sm:$0xff]  ;;  %v265_v19 = vld [vmem:[%s857_s7 + $0x128] sm:$0xff] }
  0x19   : > { %246 = vst [vmem:[%s862_s8 + $0x48] sm:$0xff] %v245_v9  ;;  %v267_v20 = vld [vmem:[%s857_s7 + $0x140] sm:$0xff]  ;;  %v269_v21 = vld [vmem:[%s857_s7 + $0x148] sm:$0xff] }
  0x1a   : > { %248 = vst [vmem:[%s862_s8 + $0x50] sm:$0xff] %v247_v10  ;;  %v271_v22 = vld [vmem:[%s857_s7 + $0x160] sm:$0xff]  ;;  %v273_v23 = vld [vmem:[%s857_s7 + $0x168] sm:$0xff] }
  0x1b   : > { %250 = vst [vmem:[%s862_s8 + $0x58] sm:$0xff] %v249_v11  ;;  %v275_v24 = vld [vmem:[%s857_s7 + $0x180] sm:$0xff]  ;;  %v277_v25 = vld [vmem:[%s857_s7 + $0x188] sm:$0xff] }
  0x1c   : > { %252 = vst [vmem:[%s862_s8 + $0x60] sm:$0xff] %v251_v12  ;;  %v279_v26 = vld [vmem:[%s857_s7 + $0x1a0] sm:$0xff]  ;;  %v281_v27 = vld [vmem:[%s857_s7 + $0x1a8] sm:$0xff] }
  0x1d   : > { %254 = vst [vmem:[%s862_s8 + $0x68] sm:$0xff] %v253_v13  ;;  %v283_v28 = vld [vmem:[%s857_s7 + $0x1c0] sm:$0xff]  ;;  %v285_v29 = vld [vmem:[%s857_s7 + $0x1c8] sm:$0xff] }
  0x1e   : > { %256 = vst [vmem:[%s862_s8 + $0x70] sm:$0xff] %v255_v14  ;;  %v287_v30 = vld [vmem:[%s857_s7 + $0x1e0] sm:$0xff]  ;;  %v289_v31 = vld [vmem:[%s857_s7 + $0x1e8] sm:$0xff] }
  0x1f   : > { %258 = vst [vmem:[%s862_s8 + $0x78] sm:$0xff] %v257_v15 }
  0x20   : > { %260 = vst [vmem:[%s862_s8 + $0x80] sm:$0xff] %v259_v16 }
  0x21   : > { %262 = vst [vmem:[%s862_s8 + $0x88] sm:$0xff] %v261_v17 }
  0x22   : > { %264 = vst [vmem:[%s862_s8 + $0x90] sm:$0xff] %v263_v18 }
  0x23   : > { %266 = vst [vmem:[%s862_s8 + $0x98] sm:$0xff] %v265_v19 }
  0x24   : > { %268 = vst [vmem:[%s862_s8 + $0xa0] sm:$0xff] %v267_v20 }
  0x25   : > { %270 = vst [vmem:[%s862_s8 + $0xa8] sm:$0xff] %v269_v21 }
  0x26   : > { %272 = vst [vmem:[%s862_s8 + $0xb0] sm:$0xff] %v271_v22 }
  0x27   : > { %274 = vst [vmem:[%s862_s8 + $0xb8] sm:$0xff] %v273_v23 }
  0x28   : > { %276 = vst [vmem:[%s862_s8 + $0xc0] sm:$0xff] %v275_v24 }
  0x29   : > { %278 = vst [vmem:[%s862_s8 + $0xc8] sm:$0xff] %v277_v25 }
  0x2a   : > { %280 = vst [vmem:[%s862_s8 + $0xd0] sm:$0xff] %v279_v26 }
  0x2b   : > { %282 = vst [vmem:[%s862_s8 + $0xd8] sm:$0xff] %v281_v27 }
  0x2c   : > { %284 = vst [vmem:[%s862_s8 + $0xe0] sm:$0xff] %v283_v28 }
  0x2d   : > { %286 = vst [vmem:[%s862_s8 + $0xe8] sm:$0xff] %v285_v29 }
  0x2e   : > { %288 = vst [vmem:[%s862_s8 + $0xf0] sm:$0xff] %v287_v30 }
  0x2f   : > { %290 = vst [vmem:[%s862_s8 + $0xf8] sm:$0xff] %v289_v31 }
  0x30 PF: > { %p689_p6 = scmp.ge.s32.totalorder %s781_s22, 1  ;;  %p312_p7 = scmp.lt.s32.totalorder %s781_s22, 3 }
  0x32   : > { %p313_p8 = pnand %p689_p6, %p312_p7 }
  0x33   : > { %s319_s9 = sand.u32 (!%p313_p8), 1, %s765_s18   ;;  %s691_s10 = sshll.u32 (!%p313_p8), %s773_s20, 1 }
  0x34   : > { %316 = sbr.rel (%p313_p8) target bundleno = 384 (0x180), region = 59  ;;  %s690_s11 = sshll.u32 (!%p313_p8), %s319_s9, 8 }
  0x35   : > { %p368_p9 = scmp.lt.s32.totalorder (!%p313_p8), %s691_s10, 3  ;;  %s692_s12 = sshll.u32 (!%p313_p8), %s773_s20, 5 }
  0x36   : > { %p373_p10 = scmp.lt.s32.totalorder (!%p313_p8), %s692_s12, 63  ;;  %s941_s18 = scalar_lea.vmem (!%p313_p8), [#allocation3], %s690_s11 }
  0x37   : > { %p694_p11 = scmp.ne.s32.totalorder (!%p313_p8), %s773_s20, 0 }
  0x39   : > { %s1057_s10 = smov (!%p368_p9, %s691_s10), 3  ;;  %s1059_s12 = smov (!%p373_p10, %s692_s12), 63 }
  0x3a   : > { %s370_s15 = scalar_lea.vmem %s1046_s2, %s1057_s10  ;;  %s693_s16 = sshll.u32 %s1059_s12, 3 }
  0x3b   : > { %s939_s25 = scalar_lea.vmem %s1047_s3, %s693_s16  ;;  %387 = sbr.rel (%p694_p11) target bundleno = 67 (0x43), region = 67 }
  0x40   : > { %v783_v32 = vmov 0.0  }
  0x41   : > { %388 = vst [vmem:[#allocation2] sm:$0xff] %v783_v32 }
  0x42   : > { %389 = vst [vmem:[#allocation2 + $0x8] sm:$0xff] %v783_v32 }
  0x43 PF: > { %v422_v33 = vld [vmem:[%s941_s18 + $0xf0] sm:$0xff]  ;;  %v423_v34 = vld [vmem:[%s941_s18 + $0xf8] sm:$0xff]  ;;  %v420_v35 = vld [vmem:[%s941_s18 + $0xe0] sm:$0xff]  ;;  %p695_p12 = scmp.ne.s32.totalorder %s773_s20, 1 }
  0x44   : > { %430 = vmatpush.msra.mxu0 %v422_v33  ;;  %453 = vmatpush.msra.mxu1 %v423_v34  ;;  %v421_v36 = vld [vmem:[%s941_s18 + $0xe8] sm:$0xff]  ;;  %v418_v37 = vld [vmem:[%s941_s18 + $0xd0] sm:$0xff]  ;;  %v419_v38 = vld [vmem:[%s941_s18 + $0xd8] sm:$0xff] }
  0x45   : > { %v416_v39 = vld [vmem:[%s941_s18 + $0xc0] sm:$0xff]  ;;  %v417_v40 = vld [vmem:[%s941_s18 + $0xc8] sm:$0xff]  ;;  %v414_v41 = vld [vmem:[%s941_s18 + $0xb0] sm:$0xff] }
  0x46   : > { %431 = vmatpush.msra.mxu0 %v420_v35  ;;  %454 = vmatpush.msra.mxu1 %v421_v36  ;;  %v415_v42 = vld [vmem:[%s941_s18 + $0xb8] sm:$0xff]  ;;  %v412_v43 = vld [vmem:[%s941_s18 + $0xa0] sm:$0xff]  ;;  %v413_v44 = vld [vmem:[%s941_s18 + $0xa8] sm:$0xff] }
  0x47   : > { %v410_v45 = vld [vmem:[%s941_s18 + $0x90] sm:$0xff]  ;;  %v411_v46 = vld [vmem:[%s941_s18 + $0x98] sm:$0xff]  ;;  %v408_v47 = vld [vmem:[%s941_s18 + $0x80] sm:$0xff] }
  0x48   : > { %432 = vmatpush.msra.mxu0 %v418_v37  ;;  %455 = vmatpush.msra.mxu1 %v419_v38  ;;  %v497_v48 = vld [vmem:[%s939_s25 + $0x78] sm:$0xff]  ;;  %v496_v51 = vld [vmem:[%s939_s25 + $0x70] sm:$0xff]  ;;  %v495_v53 = vld [vmem:[%s939_s25 + $0x68] sm:$0xff] }
  0x49   : > { %v513_v49 = vld [vmem:[%s939_s25 + $0xf8] sm:$0xff]  ;;  %514 = vmatpush.msra.mxu2 %v497_v48  ;;  %v512_v52 = vld [vmem:[%s939_s25 + $0xf0] sm:$0xff]  ;;  %v511_v54 = vld [vmem:[%s939_s25 + $0xe8] sm:$0xff] }
  0x4a   : > { %433 = vmatpush.msra.mxu0 %v416_v39  ;;  %456 = vmatpush.msra.mxu1 %v417_v40  ;;  %v409_v50 = vld [vmem:[%s941_s18 + $0x88] sm:$0xff]  ;;  %v406_v55 = vld [vmem:[%s941_s18 + $0x70] sm:$0xff]  ;;  %v407_v56 = vld [vmem:[%s941_s18 + $0x78] sm:$0xff] }
  0x4b   : > { %537 = vmatpush.msra.mxu3 %v513_v49  ;;  %515 = vmatpush.msra.mxu2 %v496_v51  ;;  %v494_v57 = vld [vmem:[%s939_s25 + $0x60] sm:$0xff]  ;;  %v404_v59 = vld [vmem:[%s941_s18 + $0x60] sm:$0xff]  ;;  %v405_v60 = vld [vmem:[%s941_s18 + $0x68] sm:$0xff] }
  0x4c   : > { %434 = vmatpush.msra.mxu0 %v414_v41  ;;  %457 = vmatpush.msra.mxu1 %v415_v42  ;;  %v510_v58 = vld [vmem:[%s939_s25 + $0xe0] sm:$0xff]  ;;  %v493_v61 = vld [vmem:[%s939_s25 + $0x58] sm:$0xff]  ;;  %v403_v0 = vld [vmem:[%s941_s18 + $0x58] sm:$0xff] }
  0x4d   : > { %538 = vmatpush.msra.mxu3 %v512_v52  ;;  %516 = vmatpush.msra.mxu2 %v495_v53  ;;  %v509_v62 = vld [vmem:[%s939_s25 + $0xd8] sm:$0xff]  ;;  %v402_v63 = vld [vmem:[%s941_s18 + $0x50] sm:$0xff]  ;;  %v492_v1 = vld [vmem:[%s939_s25 + $0x50] sm:$0xff] }
  0x4e   : > { %435 = vmatpush.msra.mxu0 %v412_v43  ;;  %458 = vmatpush.msra.mxu1 %v413_v44  ;;  %v508_v2 = vld [vmem:[%s939_s25 + $0xd0] sm:$0xff]  ;;  %v401_v4 = vld [vmem:[%s941_s18 + $0x48] sm:$0xff]  ;;  %v491_v5 = vld [vmem:[%s939_s25 + $0x48] sm:$0xff] }
  0x4f   : > { %539 = vmatpush.msra.mxu3 %v511_v54  ;;  %517 = vmatpush.msra.mxu2 %v494_v57  ;;  %v400_v3 = vld [vmem:[%s941_s18 + $0x40] sm:$0xff]  ;;  %v507_v6 = vld [vmem:[%s939_s25 + $0xc8] sm:$0xff]  ;;  %v398_v7 = vld [vmem:[%s941_s18 + $0x30] sm:$0xff] }
  0x50   : > { %436 = vmatpush.msra.mxu0 %v410_v45  ;;  %459 = vmatpush.msra.mxu1 %v411_v46  ;;  %v399_v8 = vld [vmem:[%s941_s18 + $0x38] sm:$0xff]  ;;  %v490_v9 = vld [vmem:[%s939_s25 + $0x40] sm:$0xff]  ;;  %v396_v11 = vld [vmem:[%s941_s18 + $0x20] sm:$0xff] }
  0x51   : > { %540 = vmatpush.msra.mxu3 %v510_v58  ;;  %518 = vmatpush.msra.mxu2 %v493_v61  ;;  %v506_v10 = vld [vmem:[%s939_s25 + $0xc0] sm:$0xff]  ;;  %v397_v12 = vld [vmem:[%s941_s18 + $0x28] sm:$0xff]  ;;  %v395_v16 = vld [vmem:[%s941_s18 + $0x18] sm:$0xff] }
  0x52   : > { %437 = vmatpush.msra.mxu0 %v408_v47  ;;  %460 = vmatpush.msra.mxu1 %v409_v50  ;;  %v489_v13 = vld [vmem:[%s939_s25 + $0x38] sm:$0xff]  ;;  %v394_v15 = vld [vmem:[%s941_s18 + $0x10] sm:$0xff]  ;;  %v488_v17 = vld [vmem:[%s939_s25 + $0x30] sm:$0xff] }
  0x53   : > { %541 = vmatpush.msra.mxu3 %v509_v62  ;;  %519 = vmatpush.msra.mxu2 %v492_v1  ;;  %v505_v14 = vld [vmem:[%s939_s25 + $0xb8] sm:$0xff]  ;;  %v504_v18 = vld [vmem:[%s939_s25 + $0xb0] sm:$0xff]  ;;  %v390_v21 = vld [vmem:[%s1044_s0] sm:$0xff] }
  0x54   : > { %438 = vmatpush.msra.mxu0 %v406_v55  ;;  %461 = vmatpush.msra.mxu1 %v407_v56  ;;  %v392_v19 = vld [vmem:[%s941_s18] sm:$0xff]  ;;  %v393_v20 = vld [vmem:[%s941_s18 + $0x8] sm:$0xff]  ;;  %v487_v22 = vld [vmem:[%s939_s25 + $0x28] sm:$0xff] }
  0x55   : > { %542 = vmatpush.msra.mxu3 %v508_v2  ;;  %520 = vmatpush.msra.mxu2 %v491_v5  ;;  %v503_v23 = vld [vmem:[%s939_s25 + $0xa8] sm:$0xff]  ;;  %v486_v24 = vld [vmem:[%s939_s25 + $0x20] sm:$0xff]  ;;  %v485_v26 = vld [vmem:[%s939_s25 + $0x18] sm:$0xff] }
  0x56   : > { %439 = vmatpush.msra.mxu0 %v404_v59  ;;  %462 = vmatpush.msra.mxu1 %v405_v60  ;;  %v502_v25 = vld [vmem:[%s939_s25 + $0xa0] sm:$0xff]  ;;  %v501_v27 = vld [vmem:[%s939_s25 + $0x98] sm:$0xff]  ;;  %v391_v28 = vld [vmem:[%s1044_s0 + $0x8] sm:$0xff] }
  0x57   : > { %543 = vmatpush.msra.mxu3 %v507_v6  ;;  %521 = vmatpush.msra.mxu2 %v490_v9  ;;  %v484_v29 = vld [vmem:[%s939_s25 + $0x10] sm:$0xff]  ;;  %v483_v31 = vld [vmem:[%s939_s25 + $0x8] sm:$0xff]  ;;  %v482_v33 = vld [vmem:[%s939_s25] sm:$0xff] }
  0x58   : > { %440 = vmatpush.msra.mxu0 %v402_v63  ;;  %463 = vmatpush.msra.mxu1 %v403_v0  ;;  %v500_v30 = vld [vmem:[%s939_s25 + $0x90] sm:$0xff]  ;;  %v499_v32 = vld [vmem:[%s939_s25 + $0x88] sm:$0xff]  ;;  %v498_v34 = vld [vmem:[%s939_s25 + $0x80] sm:$0xff] }
  0x59   : > { %544 = vmatpush.msra.mxu3 %v506_v10  ;;  %522 = vmatpush.msra.mxu2 %v489_v13  ;;  %v424_v35 = vld [vmem:[%s370_s15] sm:$0x3]  ;;  %v481_v56 = vld [vmem:[#allocation2 + $0x8] sm:$0xff] }
  0x5a   : > { %441 = vmatpush.msra.mxu0 %v400_v3  ;;  %464 = vmatpush.msra.mxu1 %v401_v4  ;;  %v426_v36 = vperm.slane %v424_v35, 0  ;;  %v427_v37 = vperm.slane %v424_v35, 1  ;;  %v480_v51 = vld [vmem:[#allocation2] sm:$0xff] }
  0x5b   : > { %545 = vmatpush.msra.mxu3 %v505_v14  ;;  %523 = vmatpush.msra.mxu2 %v488_v17 }
  0x5c   : > { %442 = vmatpush.msra.mxu0 %v398_v7  ;;  %465 = vmatpush.msra.mxu1 %v399_v8 }
  0x5d   : > { %546 = vmatpush.msra.mxu3 %v504_v18  ;;  %524 = vmatpush.msra.mxu2 %v487_v22 }
  0x5e   : > { %443 = vmatpush.msra.mxu0 %v396_v11  ;;  %466 = vmatpush.msra.mxu1 %v397_v12 }
  0x5f   : > { %547 = vmatpush.msra.mxu3 %v503_v23  ;;  %525 = vmatpush.msra.mxu2 %v486_v24 }
  0x60   : > { %444 = vmatpush.msra.mxu0 %v394_v15  ;;  %467 = vmatpush.msra.mxu1 %v395_v16 }
  0x61   : > { %548 = vmatpush.msra.mxu3 %v502_v25  ;;  %526 = vmatpush.msra.mxu2 %v485_v26 }
  0x62   : > { %445 = vmatpush.msra.mxu0 %v392_v19  ;;  %468 = vmatpush.msra.mxu1 %v393_v20 }
  0x63   : > { %446 = vmatmul.f32.vlgmr.msra.gmra.mxu0 %v390_v21  ;;  %469 = vmatmul.f32.vlgmr.msra.gmra.mxu1 %v390_v21 }
  0x64   : > { %549 = vmatpush.msra.mxu3 %v501_v27  ;;  %527 = vmatpush.msra.mxu2 %v484_v29 }
  0x66   : > { %550 = vmatpush.msra.mxu3 %v500_v30  ;;  %528 = vmatpush.msra.mxu2 %v483_v31 }
  0x68   : > { %551 = vmatpush.msra.mxu3 %v499_v32  ;;  %529 = vmatpush.msra.mxu2 %v482_v33 }
  0x6a   : > { %552 = vmatpush.msra.mxu3 %v498_v34 }
  0x6b   : > { %449 = vmatmul.f32.gmra.mxu0 %v391_v28  ;;  %472 = vmatmul.f32.gmra.mxu1 %v391_v28 }
  0xe0   : > { %v447_v38 = vpop.f32.mrf.mxu0  ;;  %v470_v39 = vpop.f32.mrf.mxu1 }
  0xe1   : > { %v448_v40 = vadd.f32 %v447_v38, %v426_v36  ;;  %v471_v41 = vadd.f32 %v470_v39, %v427_v37 }
  0xe3   : > { %v476_v42 = vmax.f32 %v448_v40, 0.0  ;;  %v477_v43 = vmax.f32 %v471_v41, 0.0 }
  0xe5   : > { %530 = vmatmul.f32.vlgmr.msra.gmra.mxu2 %v476_v42  ;;  %553 = vmatmul.f32.vlgmr.msra.gmra.mxu3 %v477_v43 }
  0xe8   : > { %v450_v44 = vpop.f32.mrf.mxu0  ;;  %v473_v45 = vpop.f32.mrf.mxu1 }
  0xe9   : > { %v451_v46 = vadd.f32 %v450_v44, %v426_v36  ;;  %v474_v47 = vadd.f32 %v473_v45, %v427_v37 }
  0xeb   : > { %v478_v48 = vmax.f32 %v451_v46, 0.0  ;;  %v479_v49 = vmax.f32 %v474_v47, 0.0 }
  0xed   : > { %533 = vmatmul.f32.gmra.mxu2 %v478_v48  ;;  %556 = vmatmul.f32.gmra.mxu3 %v479_v49 }
 0x168   : > { %v531_v50 = vpop.f32.mrf.mxu2  ;;  %v554_v52 = vpop.f32.mrf.mxu3 }
 0x169   : > { %v555_v53 = vadd.f32 %v554_v52, %v531_v50 }
 0x16b   : > { %v560_v54 = vadd.f32 %v555_v53, %v480_v51 }
 0x16d   : > { %562 = vst [vmem:[#allocation2] sm:$0xff] %v560_v54 }
 0x170   : > { %v534_v55 = vpop.f32.mrf.mxu2  ;;  %v557_v57 = vpop.f32.mrf.mxu3 }
 0x171   : > { %v558_v58 = vadd.f32 %v557_v57, %v534_v55  ;;  %567 = sbr.rel (%p695_p12) target bundleno = 384 (0x180), region = 71 }
 0x173   : > { %v561_v59 = vadd.f32 %v558_v58, %v481_v56 }
 0x175   : > { %563 = vst [vmem:[#allocation2 + $0x8] sm:$0xff] %v561_v59 }
 0x176   : > { %v568_v60 = vld [vmem:[#allocation2] sm:$0xff] }
 0x177   : > { %v742_v61 = vld [vmem:[%s1048_s4] ss:$0 sm:$0xff] }
 0x178   : > { %v574_v63 = vadd.f32 %v742_v61, %v568_v60 }
 0x17a   : > { %576 = vst [vmem:[%s1049_s5] sm:$0xff] %v574_v63 }
 0x17c   : > { %v569_v62 = vld [vmem:[#allocation2 + $0x8] sm:$0xff] }
 0x17d   : > { %v575_v0 = vadd.f32 %v742_v61, %v569_v62 }
 0x17f   : > { %577 = vst [vmem:[%s1049_s5 + $0x8] sm:$0xff] %v575_v0 }
 0x180 PF: > { %s15_s22 = sadd.s32 1, %s781_s22   ;;  %s1050_s18 = smov %s769_s19 }
 0x181   : > { %p12_p13 = scmp.ge.s32.totalorder %s15_s22, 4   ;;  %s1051_s19 = smov %s849_s26 }
 0x182   : > { %s1052_s20 = smov %s777_s21  ;;  %s1053_s21 = smov %s1055_s23 }
 0x183   :  { %14 = sbr.rel (!%p12_p13) target bundleno = 3 (0x3), region = 115 }

</bundles_post_ra>
